<compile_context>
chip_gen: v7x
topology: tpu7x:2x2x1
jax: 0.10.0
libtpu: 0.0.40
codegen_flags: <defaults>
</compile_context>

<pallas_src>
import functools

import jax
import jax.numpy as jnp
from jax import lax
from jax.experimental import pallas as pl
from jax.experimental.pallas import tpu as pltpu

BN_EPS = 1e-3  # ultralytics Conv uses nn.BatchNorm2d(eps=0.001)


# --------------------------------------------------------------------------
# Fused Pallas kernel: the whole C2f block for one image, resident in VMEM.
# --------------------------------------------------------------------------
def _c2f_fused_kernel(x_ref, masks_ref, w1_ref, b1_ref, mw1_ref, mb1_ref,
                      mw2_ref, mb2_ref, w2_ref, b2_ref, o_ref,
                      *, n_bn, shortcut, img_w):
    """cv1 -> n Bottlenecks (two 3x3 convs each) -> cv2, fully fused.

    Shapes (lane = padded H*W, multiple of 128; cdt = compute dtype):
      x_ref    : (C1, lane)    cdt   input image, spatial flattened
      masks_ref: (9, 1, lane)  cdt   validity mask per 3x3 tap (boundaries/pad)
      w1_ref   : (2, c, C1)    cdt   cv1 weight, pre-split into its two chunks
      b1_ref   : (2, c, 1)     f32   cv1 folded-BN bias
      mw1_ref  : (n, 9, c, c)  cdt   bottleneck conv1 weights (one mat per tap)
      mb1_ref  : (n, c, 1)     f32
      mw2_ref  : (n, 9, c, c)  cdt   bottleneck conv2 weights
      mb2_ref  : (n, c, 1)     f32
      w2_ref   : (2+n, c2, c)  cdt   cv2 weight, pre-split per concat chunk
      b2_ref   : (c2, 1)       f32
      o_ref    : (c2, lane)    cdt
    """
    cdt = x_ref.dtype

    def silu(a):                       # epilogue stays in f32
        return a * jax.nn.sigmoid(a)

    def conv3x3(x_act, w9, bias):
        # 3x3 SAME conv = 9 shifted MXU matmuls over the flattened spatial
        # axis.  Shifts are static lane rotations; image-boundary (and padded
        # tail) validity comes from the precomputed masks.  No im2col tensor.
        acc = None
        for kh in range(3):
            for kw in range(3):
                k = kh * 3 + kw
                s = (kh - 1) * img_w + (kw - 1)      # flat offset of this tap
                xs = x_act if s == 0 else jnp.roll(x_act, -s, axis=1)
                if k != 4:                           # centre tap is always valid
                    xs = xs * masks_ref[k]
                r = jnp.dot(w9[k], xs, preferred_element_type=jnp.float32)
                acc = r if acc is None else acc + r
        return acc + bias

    x = x_ref[...]

    # cv1 (1x1 conv + folded BN + SiLU), emitted directly as its two chunks
    # (no channel-slice copies).
    y0 = silu(jnp.dot(w1_ref[0], x, preferred_element_type=jnp.float32) + b1_ref[0])
    y1 = silu(jnp.dot(w1_ref[1], x, preferred_element_type=jnp.float32) + b1_ref[1])
    ys = [y0, y1]                                    # f32, VMEM/vreg resident

    for i in range(n_bn):                            # static unroll over bottlenecks
        a = silu(conv3x3(ys[-1].astype(cdt), mw1_ref[i], mb1_ref[i]))
        b = silu(conv3x3(a.astype(cdt), mw2_ref[i], mb2_ref[i]))
        ys.append(ys[-1] + b if shortcut else b)     # residual fused in-kernel

    # cv2 (1x1) over the *virtual* concat(y0, y1, m_0, ...): one weight chunk
    # per y_i is accumulated, so the concat tensor never exists anywhere.
    acc = b2_ref[...]
    for idx, y in enumerate(ys):
        acc = acc + jnp.dot(w2_ref[idx], y.astype(cdt),
                            preferred_element_type=jnp.float32)
    o_ref[...] = silu(acc).astype(o_ref.dtype)


# --------------------------------------------------------------------------
# Wrapper-side plumbing (BN fold, weight re-layout, tap masks, lane padding)
# --------------------------------------------------------------------------
def _fold_bn(w, bn, eps=BN_EPS):
    gamma, beta, mean, var = bn
    scale = gamma / jnp.sqrt(var + eps)
    return w * scale[:, None, None, None], beta - mean * scale


def _prep_1x1(w, bn, dtype):
    w_eff, b_eff = _fold_bn(w, bn)
    cout, cin = w_eff.shape[:2]
    return (w_eff.reshape(cout, cin).astype(dtype),
            b_eff.reshape(cout, 1).astype(jnp.float32))


def _prep_3x3(w, bn, dtype):
    w_eff, b_eff = _fold_bn(w, bn)
    cout, cin = w_eff.shape[:2]
    # (cout, cin, 3, 3) -> (9, cout, cin):  w9[kh*3+kw] == w[:, :, kh, kw]
    w9 = jnp.transpose(w_eff, (2, 3, 0, 1)).reshape(9, cout, cin).astype(dtype)
    return w9, b_eff.reshape(cout, 1).astype(jnp.float32)


def _vmem_limit_bytes(est_bytes):
    """Raise the scoped-VMEM limit, capped safely below physical capacity."""
    try:
        cap = int(pltpu.get_tpu_info().vmem_capacity_bytes)
    except Exception:
        cap = 64 * 1024 * 1024           # v7x per-TensorCore VMEM (smallest gen)
    return int(min(max(est_bytes, 32 * 1024 * 1024), int(0.85 * cap)))


def c2f_forward(x, params, n_bottleneck=1, shortcut=False,
                compute_dtype=jnp.float32):
    """Fused Pallas C2f forward.  x: (N, C1, H, W) float32."""
    batch, c1, H, W = x.shape
    P = H * W
    Pp = ((P + 127) // 128) * 128        # lane-dense spatial axis

    # ---- BN fold (f32) + weight re-layout, then cast to compute dtype ----
    w_cv1, b_cv1 = _prep_1x1(params["cv1_w"], params["cv1_bn"], compute_dtype)
    c = w_cv1.shape[0] // 2
    w_cv1 = w_cv1.reshape(2, c, c1)
    b_cv1 = b_cv1.reshape(2, c, 1)

    mw1, mb1, mw2, mb2 = [], [], [], []
    for i in range(n_bottleneck):
        wa, ba = _prep_3x3(params["m"][i]["cv1_w"], params["m"][i]["cv1_bn"], compute_dtype)
        wb, bb = _prep_3x3(params["m"][i]["cv2_w"], params["m"][i]["cv2_bn"], compute_dtype)
        mw1.append(wa); mb1.append(ba); mw2.append(wb); mb2.append(bb)
    mw1, mb1 = jnp.stack(mw1), jnp.stack(mb1)
    mw2, mb2 = jnp.stack(mw2), jnp.stack(mb2)

    w_cv2, b_cv2 = _prep_1x1(params["cv2_w"], params["cv2_bn"], compute_dtype)
    c2_out = w_cv2.shape[0]
    n_chunks = 2 + n_bottleneck
    # Pre-split cv2's weight along its input channels -> concat-free cv2.
    w_cv2 = w_cv2.reshape(c2_out, n_chunks, c).transpose(1, 0, 2)   # (2+n, c2, c)

    # ---- boundary-validity masks for the in-kernel shifted 3x3 taps ----
    p_idx = jnp.arange(Pp, dtype=jnp.int32)
    col = p_idx % W
    ones = jnp.ones((Pp,), dtype=bool)
    row_ok = {-1: p_idx >= W, 0: ones, 1: p_idx < (H - 1) * W}
    col_ok = {-1: col >= 1, 0: ones, 1: col <= W - 2}
    masks = jnp.stack([(row_ok[kh - 1] & col_ok[kw - 1]).astype(compute_dtype)
                       for kh in range(3) for kw in range(3)])
    masks = masks.reshape(9, 1, Pp)

    x_flat = x.reshape(batch, c1, P).astype(compute_dtype)
    if Pp != P:
        x_flat = jnp.pad(x_flat, ((0, 0), (0, 0), (0, Pp - P)))

    kernel = functools.partial(_c2f_fused_kernel, n_bn=n_bottleneck,
                               shortcut=bool(shortcut), img_w=W)

    itemsize = jnp.dtype(compute_dtype).itemsize
    weight_bytes = sum(int(a.size) * jnp.dtype(a.dtype).itemsize
                       for a in (masks, w_cv1, b_cv1, mw1, mb1, mw2, mb2, w_cv2, b_cv2))
    est_vmem = (2 * itemsize * Pp * (c1 + c2_out)     # double-buffered in/out blocks
                + 2 * weight_bytes                    # default 2-deep buffering
                + 4 * Pp * c * (n_chunks + 6))        # f32 resident ys + conv temps
    flops = 2 * batch * Pp * (2 * c * c1
                              + n_bottleneck * 2 * 9 * c * c
                              + c2_out * n_chunks * c)
    transc = batch * Pp * (2 * c + n_bottleneck * 2 * c + c2_out)

    def const_spec(arr):
        # Grid-invariant operand: fetched once (index_map constant across steps).
        # Single-buffering (pl.Buffered(1)) would shave a few KiB of VMEM but is
        # left at the default for compatibility; these operands are tiny.
        return pl.BlockSpec(arr.shape, lambda i, _nd=arr.ndim: (0,) * _nd)

    out = pl.pallas_call(
        kernel,
        out_shape=jax.ShapeDtypeStruct((batch, c2_out, Pp), compute_dtype),
        grid_spec=pltpu.PrefetchScalarGridSpec(
            num_scalar_prefetch=0,
            grid=(batch,),               # whole image per step -> full fusion in VMEM
            in_specs=[
                pl.BlockSpec((None, c1, Pp), lambda i: (i, 0, 0)),
                const_spec(masks),
                const_spec(w_cv1), const_spec(b_cv1),
                const_spec(mw1), const_spec(mb1),
                const_spec(mw2), const_spec(mb2),
                const_spec(w_cv2), const_spec(b_cv2),
            ],
            out_specs=pl.BlockSpec((None, c2_out, Pp), lambda i: (i, 0, 0)),
        ),
        compiler_params=pltpu.CompilerParams(
            dimension_semantics=("parallel",),
            vmem_limit_bytes=_vmem_limit_bytes(int(est_vmem * 1.5) + (1 << 20)),
        ),
        cost_estimate=pl.CostEstimate(
            flops=int(flops), transcendentals=int(transc),
            bytes_accessed=int(itemsize * batch * Pp * (c1 + c2_out) + weight_bytes)),
    )(x_flat, masks, w_cv1, b_cv1, mw1, mb1, mw2, mb2, w_cv2, b_cv2)

    if Pp != P:
        out = out[:, :, :P]
    return out.reshape(batch, c2_out, H, W)


# --------------------------------------------------------------------------
# Pure-JAX reference (lax.conv + explicit BN + SiLU) for correctness check
# --------------------------------------------------------------------------
def _ref_conv_bn_silu(x, w, bn, eps=BN_EPS):
    gamma, beta, mean, var = bn
    y = lax.conv_general_dilated(
        x, w, window_strides=(1, 1), padding="SAME",
        dimension_numbers=("NCHW", "OIHW", "NCHW"))
    y = (y - mean[None, :, None, None]) / jnp.sqrt(var[None, :, None, None] + eps)
    y = y * gamma[None, :, None, None] + beta[None, :, None, None]
    return y * jax.nn.sigmoid(y)


def ref_c2f(x, params, n_bottleneck=1, shortcut=False):
    t = _ref_conv_bn_silu(x, params["cv1_w"], params["cv1_bn"])
    c = t.shape[1] // 2
    ys = [t[:, :c], t[:, c:]]
    for i in range(n_bottleneck):
        bw = params["m"][i]
        a = _ref_conv_bn_silu(ys[-1], bw["cv1_w"], bw["cv1_bn"])
        b = _ref_conv_bn_silu(a, bw["cv2_w"], bw["cv2_bn"])
        if shortcut:
            b = ys[-1] + b
        ys.append(b)
    cat = jnp.concatenate(ys, axis=1)
    return _ref_conv_bn_silu(cat, params["cv2_w"], params["cv2_bn"])


# --------------------------------------------------------------------------
# Parameter construction + test
# --------------------------------------------------------------------------
def _make_conv_params(key, cout, cin, k):
    kw_, kg, kb, km, kv = jax.random.split(key, 5)
    w = jax.random.normal(kw_, (cout, cin, k, k), jnp.float32) * 0.1
    gamma = jax.random.uniform(kg, (cout,), jnp.float32, 0.5, 1.5)
    beta = jax.random.normal(kb, (cout,), jnp.float32) * 0.1
    mean = jax.random.normal(km, (cout,), jnp.float32) * 0.1
    var = jax.random.uniform(kv, (cout,), jnp.float32, 0.5, 1.5)
    return w, (gamma, beta, mean, var)


def _make_c2f_params(key, c1, c2, n):
    c = c2 // 2                                   # e = 0.5
    keys = jax.random.split(key, 2 + 2 * n)
    cv1_w, cv1_bn = _make_conv_params(keys[0], 2 * c, c1, 1)
    m = []
    for i in range(n):
        w1, bn1 = _make_conv_params(keys[2 + 2 * i], c, c, 3)
        w2, bn2 = _make_conv_params(keys[3 + 2 * i], c, c, 3)
        m.append(dict(cv1_w=w1, cv1_bn=bn1, cv2_w=w2, cv2_bn=bn2))
    cv2_w, cv2_bn = _make_conv_params(keys[1], c2, (2 + n) * c, 1)
    return dict(cv1_w=cv1_w, cv1_bn=cv1_bn, cv2_w=cv2_w, cv2_bn=cv2_bn, m=m)


if __name__ == "__main__":
    key = jax.random.PRNGKey(0)
    kx, kp1, kp2 = jax.random.split(key, 3)

    # C2f(c1=4, c2=8, e=0.5) on a (2, 4, 16, 16) input
    N, C1, C2_OUT, H, W = 2, 4, 8, 16, 16
    x = jax.random.normal(kx, (N, C1, H, W), jnp.float32)

    cases = [
        # (n_bottleneck, shortcut, compute dtype, tolerance)
        (1, False, jnp.float32, 2e-3),     # C2f defaults
        (2, True,  jnp.float32, 2e-3),     # multi-bottleneck + fused residual
        (1, False, jnp.bfloat16, 5e-2),    # bf16 weights/activations, f32 accum
    ]
    for n_bn, shortcut, cdt, tol in cases:
        params = _make_c2f_params(kp1 if n_bn == 1 else kp2, C1, C2_OUT, n_bn)
        y = c2f_forward(x, params, n_bottleneck=n_bn, shortcut=shortcut,
                        compute_dtype=cdt)
        y = jax.block_until_ready(y)

        y_ref = ref_c2f(x, params, n_bottleneck=n_bn, shortcut=shortcut)
        assert y.shape == y_ref.shape == (N, C2_OUT, H, W)
        y32 = y.astype(jnp.float32)
        max_err = float(jnp.max(jnp.abs(y32 - y_ref)))
        assert jnp.allclose(y32, y_ref, atol=tol, rtol=tol), (
            f"n={n_bn} shortcut={shortcut} dtype={jnp.dtype(cdt).name} "
            f"max_err={max_err}")

    print("KERNEL_OK")
</pallas_src>

<mosaic_0001>
module attributes {stable_mosaic.version = 11 : i64} {
  func.func @_c2f_fused_kernel(%arg0: i32, %arg1: memref<1x4x256xf32, #tpu.memory_space<vmem>>, %arg2: memref<9x1x256xf32, #tpu.memory_space<vmem>>, %arg3: memref<2x4x4xf32, #tpu.memory_space<vmem>>, %arg4: memref<2x4x1xf32, #tpu.memory_space<vmem>>, %arg5: memref<1x9x4x4xf32, #tpu.memory_space<vmem>>, %arg6: memref<1x4x1xf32, #tpu.memory_space<vmem>>, %arg7: memref<1x9x4x4xf32, #tpu.memory_space<vmem>>, %arg8: memref<1x4x1xf32, #tpu.memory_space<vmem>>, %arg9: memref<3x8x4xf32, #tpu.memory_space<vmem>>, %arg10: memref<8x1xf32, #tpu.memory_space<vmem>>, %arg11: memref<1x8x256xf32, #tpu.memory_space<vmem>>) attributes {dimension_semantics = [#tpu.dimension_semantics<parallel>], iteration_bounds = array<i64: 2>, scalar_prefetch = 0 : i64, scratch_operands = 0 : i64, tpu.core_type = #tpu.core_type<tc>, window_params = [{transform_indices = @transform_0, window_bounds = array<i64: 1, 4, 256>}, {pipeline_mode = #tpu.pipeline_mode<synchronous>, transform_indices = @transform_1, window_bounds = array<i64: 9, 1, 256>}, {pipeline_mode = #tpu.pipeline_mode<synchronous>, transform_indices = @transform_2, window_bounds = array<i64: 2, 4, 4>}, {pipeline_mode = #tpu.pipeline_mode<synchronous>, transform_indices = @transform_3, window_bounds = array<i64: 2, 4, 1>}, {pipeline_mode = #tpu.pipeline_mode<synchronous>, transform_indices = @transform_4, window_bounds = array<i64: 1, 9, 4, 4>}, {pipeline_mode = #tpu.pipeline_mode<synchronous>, transform_indices = @transform_5, window_bounds = array<i64: 1, 4, 1>}, {pipeline_mode = #tpu.pipeline_mode<synchronous>, transform_indices = @transform_6, window_bounds = array<i64: 1, 9, 4, 4>}, {pipeline_mode = #tpu.pipeline_mode<synchronous>, transform_indices = @transform_7, window_bounds = array<i64: 1, 4, 1>}, {pipeline_mode = #tpu.pipeline_mode<synchronous>, transform_indices = @transform_8, window_bounds = array<i64: 3, 8, 4>}, {pipeline_mode = #tpu.pipeline_mode<synchronous>, transform_indices = @transform_9, window_bounds = array<i64: 8, 1>}, {transform_indices = @transform_10, window_bounds = array<i64: 1, 8, 256>}]} {
    %c0 = arith.constant 0 : index
    %c0_0 = arith.constant 0 : index
    %c0_1 = arith.constant 0 : index
    %0 = vector.load %arg1[%c0, %c0_0, %c0_1] : memref<1x4x256xf32, #tpu.memory_space<vmem>>, vector<1x4x256xf32>
    %1 = vector.shape_cast %0 : vector<1x4x256xf32> to vector<4x256xf32>
    %c0_2 = arith.constant 0 : index
    %c0_3 = arith.constant 0 : index
    %c0_4 = arith.constant 0 : index
    %2 = vector.load %arg3[%c0_2, %c0_3, %c0_4] : memref<2x4x4xf32, #tpu.memory_space<vmem>>, vector<1x4x4xf32>
    %3 = vector.shape_cast %2 : vector<1x4x4xf32> to vector<4x4xf32>
    %cst = arith.constant dense<0.000000e+00> : vector<4x256xf32>
    %4 = tpu.matmul %3, %1, %cst {dimension_numbers = #tpu.dot_dimension_numbers<[1], [0], [0], [1], [0, 0, 1, 1], [], []>} : vector<4x4xf32>, vector<4x256xf32>, vector<4x256xf32> -> vector<4x256xf32>
    %c0_5 = arith.constant 0 : index
    %c0_6 = arith.constant 0 : index
    %c0_7 = arith.constant 0 : index
    %5 = vector.load %arg4[%c0_5, %c0_6, %c0_7] : memref<2x4x1xf32, #tpu.memory_space<vmem>>, vector<1x4x1xf32>
    %6 = vector.shape_cast %5 : vector<1x4x1xf32> to vector<4x1xf32>
    %7 = vector.broadcast %6 : vector<4x1xf32> to vector<4x256xf32>
    %8 = arith.addf %4, %7 : vector<4x256xf32>
    %9 = arith.negf %8 : vector<4x256xf32>
    %10 = math.exp %9 : vector<4x256xf32>
    %cst_8 = arith.constant 1.000000e+00 : f32
    %11 = vector.broadcast %cst_8 : f32 to vector<4x256xf32>
    %12 = arith.addf %11, %10 : vector<4x256xf32>
    %13 = arith.divf %11, %12 : vector<4x256xf32>
    %14 = arith.mulf %8, %13 : vector<4x256xf32>
    %c1 = arith.constant 1 : index
    %c0_9 = arith.constant 0 : index
    %c0_10 = arith.constant 0 : index
    %15 = vector.load %arg3[%c1, %c0_9, %c0_10] : memref<2x4x4xf32, #tpu.memory_space<vmem>>, vector<1x4x4xf32>
    %16 = vector.shape_cast %15 : vector<1x4x4xf32> to vector<4x4xf32>
    %cst_11 = arith.constant dense<0.000000e+00> : vector<4x256xf32>
    %17 = tpu.matmul %16, %1, %cst_11 {dimension_numbers = #tpu.dot_dimension_numbers<[1], [0], [0], [1], [0, 0, 1, 1], [], []>} : vector<4x4xf32>, vector<4x256xf32>, vector<4x256xf32> -> vector<4x256xf32>
    %c1_12 = arith.constant 1 : index
    %c0_13 = arith.constant 0 : index
    %c0_14 = arith.constant 0 : index
    %18 = vector.load %arg4[%c1_12, %c0_13, %c0_14] : memref<2x4x1xf32, #tpu.memory_space<vmem>>, vector<1x4x1xf32>
    %19 = vector.shape_cast %18 : vector<1x4x1xf32> to vector<4x1xf32>
    %20 = vector.broadcast %19 : vector<4x1xf32> to vector<4x256xf32>
    %21 = arith.addf %17, %20 : vector<4x256xf32>
    %22 = arith.negf %21 : vector<4x256xf32>
    %23 = math.exp %22 : vector<4x256xf32>
    %cst_15 = arith.constant 1.000000e+00 : f32
    %24 = vector.broadcast %cst_15 : f32 to vector<4x256xf32>
    %25 = arith.addf %24, %23 : vector<4x256xf32>
    %26 = arith.divf %24, %25 : vector<4x256xf32>
    %27 = arith.mulf %21, %26 : vector<4x256xf32>
    %c0_16 = arith.constant 0 : index
    %c0_17 = arith.constant 0 : index
    %c0_18 = arith.constant 0 : index
    %c0_19 = arith.constant 0 : index
    %28 = vector.load %arg5[%c0_16, %c0_17, %c0_18, %c0_19] : memref<1x9x4x4xf32, #tpu.memory_space<vmem>>, vector<1x9x4x4xf32>
    %29 = vector.shape_cast %28 : vector<1x9x4x4xf32> to vector<9x4x4xf32>
    %c0_20 = arith.constant 0 : index
    %c0_21 = arith.constant 0 : index
    %c0_22 = arith.constant 0 : index
    %30 = vector.load %arg6[%c0_20, %c0_21, %c0_22] : memref<1x4x1xf32, #tpu.memory_space<vmem>>, vector<1x4x1xf32>
    %31 = vector.shape_cast %30 : vector<1x4x1xf32> to vector<4x1xf32>
    %32 = vector.extract_strided_slice %27 {offsets = [0, 239], sizes = [4, 17], strides = [1, 1]} : vector<4x256xf32> to vector<4x17xf32>
    %33 = vector.extract_strided_slice %27 {offsets = [0, 0], sizes = [4, 239], strides = [1, 1]} : vector<4x256xf32> to vector<4x239xf32>
    %34 = tpu.concatenate %32, %33 in 1 : vector<4x17xf32>, vector<4x239xf32> -> vector<4x256xf32>
    %c0_23 = arith.constant 0 : index
    %c0_24 = arith.constant 0 : index
    %c0_25 = arith.constant 0 : index
    %35 = vector.load %arg2[%c0_23, %c0_24, %c0_25] : memref<9x1x256xf32, #tpu.memory_space<vmem>>, vector<1x1x256xf32>
    %36 = vector.shape_cast %35 : vector<1x1x256xf32> to vector<1x256xf32>
    %37 = vector.broadcast %36 : vector<1x256xf32> to vector<4x256xf32>
    %38 = arith.mulf %34, %37 : vector<4x256xf32>
    %39 = vector.extract_strided_slice %29 {offsets = [0, 0, 0], sizes = [1, 4, 4], strides = [1, 1, 1]} : vector<9x4x4xf32> to vector<1x4x4xf32>
    %40 = vector.shape_cast %39 : vector<1x4x4xf32> to vector<4x4xf32>
    %cst_26 = arith.constant dense<0.000000e+00> : vector<4x256xf32>
    %41 = tpu.matmul %40, %38, %cst_26 {dimension_numbers = #tpu.dot_dimension_numbers<[1], [0], [0], [1], [0, 0, 1, 1], [], []>} : vector<4x4xf32>, vector<4x256xf32>, vector<4x256xf32> -> vector<4x256xf32>
    %42 = vector.extract_strided_slice %27 {offsets = [0, 240], sizes = [4, 16], strides = [1, 1]} : vector<4x256xf32> to vector<4x16xf32>
    %43 = vector.extract_strided_slice %27 {offsets = [0, 0], sizes = [4, 240], strides = [1, 1]} : vector<4x256xf32> to vector<4x240xf32>
    %44 = tpu.concatenate %42, %43 in 1 : vector<4x16xf32>, vector<4x240xf32> -> vector<4x256xf32>
    %c1_27 = arith.constant 1 : index
    %c0_28 = arith.constant 0 : index
    %c0_29 = arith.constant 0 : index
    %45 = vector.load %arg2[%c1_27, %c0_28, %c0_29] : memref<9x1x256xf32, #tpu.memory_space<vmem>>, vector<1x1x256xf32>
    %46 = vector.shape_cast %45 : vector<1x1x256xf32> to vector<1x256xf32>
    %47 = vector.broadcast %46 : vector<1x256xf32> to vector<4x256xf32>
    %48 = arith.mulf %44, %47 : vector<4x256xf32>
    %49 = vector.extract_strided_slice %29 {offsets = [1, 0, 0], sizes = [1, 4, 4], strides = [1, 1, 1]} : vector<9x4x4xf32> to vector<1x4x4xf32>
    %50 = vector.shape_cast %49 : vector<1x4x4xf32> to vector<4x4xf32>
    %cst_30 = arith.constant dense<0.000000e+00> : vector<4x256xf32>
    %51 = tpu.matmul %50, %48, %cst_30 {dimension_numbers = #tpu.dot_dimension_numbers<[1], [0], [0], [1], [0, 0, 1, 1], [], []>} : vector<4x4xf32>, vector<4x256xf32>, vector<4x256xf32> -> vector<4x256xf32>
    %52 = arith.addf %41, %51 : vector<4x256xf32>
    %53 = vector.extract_strided_slice %27 {offsets = [0, 241], sizes = [4, 15], strides = [1, 1]} : vector<4x256xf32> to vector<4x15xf32>
    %54 = vector.extract_strided_slice %27 {offsets = [0, 0], sizes = [4, 241], strides = [1, 1]} : vector<4x256xf32> to vector<4x241xf32>
    %55 = tpu.concatenate %53, %54 in 1 : vector<4x15xf32>, vector<4x241xf32> -> vector<4x256xf32>
    %c2 = arith.constant 2 : index
    %c0_31 = arith.constant 0 : index
    %c0_32 = arith.constant 0 : index
    %56 = vector.load %arg2[%c2, %c0_31, %c0_32] : memref<9x1x256xf32, #tpu.memory_space<vmem>>, vector<1x1x256xf32>
    %57 = vector.shape_cast %56 : vector<1x1x256xf32> to vector<1x256xf32>
    %58 = vector.broadcast %57 : vector<1x256xf32> to vector<4x256xf32>
    %59 = arith.mulf %55, %58 : vector<4x256xf32>
    %60 = vector.extract_strided_slice %29 {offsets = [2, 0, 0], sizes = [1, 4, 4], strides = [1, 1, 1]} : vector<9x4x4xf32> to vector<1x4x4xf32>
    %61 = vector.shape_cast %60 : vector<1x4x4xf32> to vector<4x4xf32>
    %cst_33 = arith.constant dense<0.000000e+00> : vector<4x256xf32>
    %62 = tpu.matmul %61, %59, %cst_33 {dimension_numbers = #tpu.dot_dimension_numbers<[1], [0], [0], [1], [0, 0, 1, 1], [], []>} : vector<4x4xf32>, vector<4x256xf32>, vector<4x256xf32> -> vector<4x256xf32>
    %63 = arith.addf %52, %62 : vector<4x256xf32>
    %64 = vector.extract_strided_slice %27 {offsets = [0, 255], sizes = [4, 1], strides = [1, 1]} : vector<4x256xf32> to vector<4x1xf32>
    %65 = vector.extract_strided_slice %27 {offsets = [0, 0], sizes = [4, 255], strides = [1, 1]} : vector<4x256xf32> to vector<4x255xf32>
    %66 = tpu.concatenate %64, %65 in 1 : vector<4x1xf32>, vector<4x255xf32> -> vector<4x256xf32>
    %c3 = arith.constant 3 : index
    %c0_34 = arith.constant 0 : index
    %c0_35 = arith.constant 0 : index
    %67 = vector.load %arg2[%c3, %c0_34, %c0_35] : memref<9x1x256xf32, #tpu.memory_space<vmem>>, vector<1x1x256xf32>
    %68 = vector.shape_cast %67 : vector<1x1x256xf32> to vector<1x256xf32>
    %69 = vector.broadcast %68 : vector<1x256xf32> to vector<4x256xf32>
    %70 = arith.mulf %66, %69 : vector<4x256xf32>
    %71 = vector.extract_strided_slice %29 {offsets = [3, 0, 0], sizes = [1, 4, 4], strides = [1, 1, 1]} : vector<9x4x4xf32> to vector<1x4x4xf32>
    %72 = vector.shape_cast %71 : vector<1x4x4xf32> to vector<4x4xf32>
    %cst_36 = arith.constant dense<0.000000e+00> : vector<4x256xf32>
    %73 = tpu.matmul %72, %70, %cst_36 {dimension_numbers = #tpu.dot_dimension_numbers<[1], [0], [0], [1], [0, 0, 1, 1], [], []>} : vector<4x4xf32>, vector<4x256xf32>, vector<4x256xf32> -> vector<4x256xf32>
    %74 = arith.addf %63, %73 : vector<4x256xf32>
    %75 = vector.extract_strided_slice %29 {offsets = [4, 0, 0], sizes = [1, 4, 4], strides = [1, 1, 1]} : vector<9x4x4xf32> to vector<1x4x4xf32>
    %76 = vector.shape_cast %75 : vector<1x4x4xf32> to vector<4x4xf32>
    %cst_37 = arith.constant dense<0.000000e+00> : vector<4x256xf32>
    %77 = tpu.matmul %76, %27, %cst_37 {dimension_numbers = #tpu.dot_dimension_numbers<[1], [0], [0], [1], [0, 0, 1, 1], [], []>} : vector<4x4xf32>, vector<4x256xf32>, vector<4x256xf32> -> vector<4x256xf32>
    %78 = arith.addf %74, %77 : vector<4x256xf32>
    %79 = vector.extract_strided_slice %27 {offsets = [0, 1], sizes = [4, 255], strides = [1, 1]} : vector<4x256xf32> to vector<4x255xf32>
    %80 = vector.extract_strided_slice %27 {offsets = [0, 0], sizes = [4, 1], strides = [1, 1]} : vector<4x256xf32> to vector<4x1xf32>
    %81 = tpu.concatenate %79, %80 in 1 : vector<4x255xf32>, vector<4x1xf32> -> vector<4x256xf32>
    %c5 = arith.constant 5 : index
    %c0_38 = arith.constant 0 : index
    %c0_39 = arith.constant 0 : index
    %82 = vector.load %arg2[%c5, %c0_38, %c0_39] : memref<9x1x256xf32, #tpu.memory_space<vmem>>, vector<1x1x256xf32>
    %83 = vector.shape_cast %82 : vector<1x1x256xf32> to vector<1x256xf32>
    %84 = vector.broadcast %83 : vector<1x256xf32> to vector<4x256xf32>
    %85 = arith.mulf %81, %84 : vector<4x256xf32>
    %86 = vector.extract_strided_slice %29 {offsets = [5, 0, 0], sizes = [1, 4, 4], strides = [1, 1, 1]} : vector<9x4x4xf32> to vector<1x4x4xf32>
    %87 = vector.shape_cast %86 : vector<1x4x4xf32> to vector<4x4xf32>
    %cst_40 = arith.constant dense<0.000000e+00> : vector<4x256xf32>
    %88 = tpu.matmul %87, %85, %cst_40 {dimension_numbers = #tpu.dot_dimension_numbers<[1], [0], [0], [1], [0, 0, 1, 1], [], []>} : vector<4x4xf32>, vector<4x256xf32>, vector<4x256xf32> -> vector<4x256xf32>
    %89 = arith.addf %78, %88 : vector<4x256xf32>
    %90 = vector.extract_strided_slice %27 {offsets = [0, 15], sizes = [4, 241], strides = [1, 1]} : vector<4x256xf32> to vector<4x241xf32>
    %91 = vector.extract_strided_slice %27 {offsets = [0, 0], sizes = [4, 15], strides = [1, 1]} : vector<4x256xf32> to vector<4x15xf32>
    %92 = tpu.concatenate %90, %91 in 1 : vector<4x241xf32>, vector<4x15xf32> -> vector<4x256xf32>
    %c6 = arith.constant 6 : index
    %c0_41 = arith.constant 0 : index
    %c0_42 = arith.constant 0 : index
    %93 = vector.load %arg2[%c6, %c0_41, %c0_42] : memref<9x1x256xf32, #tpu.memory_space<vmem>>, vector<1x1x256xf32>
    %94 = vector.shape_cast %93 : vector<1x1x256xf32> to vector<1x256xf32>
    %95 = vector.broadcast %94 : vector<1x256xf32> to vector<4x256xf32>
    %96 = arith.mulf %92, %95 : vector<4x256xf32>
    %97 = vector.extract_strided_slice %29 {offsets = [6, 0, 0], sizes = [1, 4, 4], strides = [1, 1, 1]} : vector<9x4x4xf32> to vector<1x4x4xf32>
    %98 = vector.shape_cast %97 : vector<1x4x4xf32> to vector<4x4xf32>
    %cst_43 = arith.constant dense<0.000000e+00> : vector<4x256xf32>
    %99 = tpu.matmul %98, %96, %cst_43 {dimension_numbers = #tpu.dot_dimension_numbers<[1], [0], [0], [1], [0, 0, 1, 1], [], []>} : vector<4x4xf32>, vector<4x256xf32>, vector<4x256xf32> -> vector<4x256xf32>
    %100 = arith.addf %89, %99 : vector<4x256xf32>
    %101 = vector.extract_strided_slice %27 {offsets = [0, 16], sizes = [4, 240], strides = [1, 1]} : vector<4x256xf32> to vector<4x240xf32>
    %102 = vector.extract_strided_slice %27 {offsets = [0, 0], sizes = [4, 16], strides = [1, 1]} : vector<4x256xf32> to vector<4x16xf32>
    %103 = tpu.concatenate %101, %102 in 1 : vector<4x240xf32>, vector<4x16xf32> -> vector<4x256xf32>
    %c7 = arith.constant 7 : index
    %c0_44 = arith.constant 0 : index
    %c0_45 = arith.constant 0 : index
    %104 = vector.load %arg2[%c7, %c0_44, %c0_45] : memref<9x1x256xf32, #tpu.memory_space<vmem>>, vector<1x1x256xf32>
    %105 = vector.shape_cast %104 : vector<1x1x256xf32> to vector<1x256xf32>
    %106 = vector.broadcast %105 : vector<1x256xf32> to vector<4x256xf32>
    %107 = arith.mulf %103, %106 : vector<4x256xf32>
    %108 = vector.extract_strided_slice %29 {offsets = [7, 0, 0], sizes = [1, 4, 4], strides = [1, 1, 1]} : vector<9x4x4xf32> to vector<1x4x4xf32>
    %109 = vector.shape_cast %108 : vector<1x4x4xf32> to vector<4x4xf32>
    %cst_46 = arith.constant dense<0.000000e+00> : vector<4x256xf32>
    %110 = tpu.matmul %109, %107, %cst_46 {dimension_numbers = #tpu.dot_dimension_numbers<[1], [0], [0], [1], [0, 0, 1, 1], [], []>} : vector<4x4xf32>, vector<4x256xf32>, vector<4x256xf32> -> vector<4x256xf32>
    %111 = arith.addf %100, %110 : vector<4x256xf32>
    %112 = vector.extract_strided_slice %27 {offsets = [0, 17], sizes = [4, 239], strides = [1, 1]} : vector<4x256xf32> to vector<4x239xf32>
    %113 = vector.extract_strided_slice %27 {offsets = [0, 0], sizes = [4, 17], strides = [1, 1]} : vector<4x256xf32> to vector<4x17xf32>
    %114 = tpu.concatenate %112, %113 in 1 : vector<4x239xf32>, vector<4x17xf32> -> vector<4x256xf32>
    %c8 = arith.constant 8 : index
    %c0_47 = arith.constant 0 : index
    %c0_48 = arith.constant 0 : index
    %115 = vector.load %arg2[%c8, %c0_47, %c0_48] : memref<9x1x256xf32, #tpu.memory_space<vmem>>, vector<1x1x256xf32>
    %116 = vector.shape_cast %115 : vector<1x1x256xf32> to vector<1x256xf32>
    %117 = vector.broadcast %116 : vector<1x256xf32> to vector<4x256xf32>
    %118 = arith.mulf %114, %117 : vector<4x256xf32>
    %119 = vector.extract_strided_slice %29 {offsets = [8, 0, 0], sizes = [1, 4, 4], strides = [1, 1, 1]} : vector<9x4x4xf32> to vector<1x4x4xf32>
    %120 = vector.shape_cast %119 : vector<1x4x4xf32> to vector<4x4xf32>
    %cst_49 = arith.constant dense<0.000000e+00> : vector<4x256xf32>
    %121 = tpu.matmul %120, %118, %cst_49 {dimension_numbers = #tpu.dot_dimension_numbers<[1], [0], [0], [1], [0, 0, 1, 1], [], []>} : vector<4x4xf32>, vector<4x256xf32>, vector<4x256xf32> -> vector<4x256xf32>
    %122 = arith.addf %111, %121 : vector<4x256xf32>
    %123 = vector.broadcast %31 : vector<4x1xf32> to vector<4x256xf32>
    %124 = arith.addf %122, %123 : vector<4x256xf32>
    %125 = arith.negf %124 : vector<4x256xf32>
    %126 = math.exp %125 : vector<4x256xf32>
    %cst_50 = arith.constant 1.000000e+00 : f32
    %127 = vector.broadcast %cst_50 : f32 to vector<4x256xf32>
    %128 = arith.addf %127, %126 : vector<4x256xf32>
    %129 = arith.divf %127, %128 : vector<4x256xf32>
    %130 = arith.mulf %124, %129 : vector<4x256xf32>
    %c0_51 = arith.constant 0 : index
    %c0_52 = arith.constant 0 : index
    %c0_53 = arith.constant 0 : index
    %c0_54 = arith.constant 0 : index
    %131 = vector.load %arg7[%c0_51, %c0_52, %c0_53, %c0_54] : memref<1x9x4x4xf32, #tpu.memory_space<vmem>>, vector<1x9x4x4xf32>
    %132 = vector.shape_cast %131 : vector<1x9x4x4xf32> to vector<9x4x4xf32>
    %c0_55 = arith.constant 0 : index
    %c0_56 = arith.constant 0 : index
    %c0_57 = arith.constant 0 : index
    %133 = vector.load %arg8[%c0_55, %c0_56, %c0_57] : memref<1x4x1xf32, #tpu.memory_space<vmem>>, vector<1x4x1xf32>
    %134 = vector.shape_cast %133 : vector<1x4x1xf32> to vector<4x1xf32>
    %135 = vector.extract_strided_slice %130 {offsets = [0, 239], sizes = [4, 17], strides = [1, 1]} : vector<4x256xf32> to vector<4x17xf32>
    %136 = vector.extract_strided_slice %130 {offsets = [0, 0], sizes = [4, 239], strides = [1, 1]} : vector<4x256xf32> to vector<4x239xf32>
    %137 = tpu.concatenate %135, %136 in 1 : vector<4x17xf32>, vector<4x239xf32> -> vector<4x256xf32>
    %c0_58 = arith.constant 0 : index
    %c0_59 = arith.constant 0 : index
    %c0_60 = arith.constant 0 : index
    %138 = vector.load %arg2[%c0_58, %c0_59, %c0_60] : memref<9x1x256xf32, #tpu.memory_space<vmem>>, vector<1x1x256xf32>
    %139 = vector.shape_cast %138 : vector<1x1x256xf32> to vector<1x256xf32>
    %140 = vector.broadcast %139 : vector<1x256xf32> to vector<4x256xf32>
    %141 = arith.mulf %137, %140 : vector<4x256xf32>
    %142 = vector.extract_strided_slice %132 {offsets = [0, 0, 0], sizes = [1, 4, 4], strides = [1, 1, 1]} : vector<9x4x4xf32> to vector<1x4x4xf32>
    %143 = vector.shape_cast %142 : vector<1x4x4xf32> to vector<4x4xf32>
    %cst_61 = arith.constant dense<0.000000e+00> : vector<4x256xf32>
    %144 = tpu.matmul %143, %141, %cst_61 {dimension_numbers = #tpu.dot_dimension_numbers<[1], [0], [0], [1], [0, 0, 1, 1], [], []>} : vector<4x4xf32>, vector<4x256xf32>, vector<4x256xf32> -> vector<4x256xf32>
    %145 = vector.extract_strided_slice %130 {offsets = [0, 240], sizes = [4, 16], strides = [1, 1]} : vector<4x256xf32> to vector<4x16xf32>
    %146 = vector.extract_strided_slice %130 {offsets = [0, 0], sizes = [4, 240], strides = [1, 1]} : vector<4x256xf32> to vector<4x240xf32>
    %147 = tpu.concatenate %145, %146 in 1 : vector<4x16xf32>, vector<4x240xf32> -> vector<4x256xf32>
    %c1_62 = arith.constant 1 : index
    %c0_63 = arith.constant 0 : index
    %c0_64 = arith.constant 0 : index
    %148 = vector.load %arg2[%c1_62, %c0_63, %c0_64] : memref<9x1x256xf32, #tpu.memory_space<vmem>>, vector<1x1x256xf32>
    %149 = vector.shape_cast %148 : vector<1x1x256xf32> to vector<1x256xf32>
    %150 = vector.broadcast %149 : vector<1x256xf32> to vector<4x256xf32>
    %151 = arith.mulf %147, %150 : vector<4x256xf32>
    %152 = vector.extract_strided_slice %132 {offsets = [1, 0, 0], sizes = [1, 4, 4], strides = [1, 1, 1]} : vector<9x4x4xf32> to vector<1x4x4xf32>
    %153 = vector.shape_cast %152 : vector<1x4x4xf32> to vector<4x4xf32>
    %cst_65 = arith.constant dense<0.000000e+00> : vector<4x256xf32>
    %154 = tpu.matmul %153, %151, %cst_65 {dimension_numbers = #tpu.dot_dimension_numbers<[1], [0], [0], [1], [0, 0, 1, 1], [], []>} : vector<4x4xf32>, vector<4x256xf32>, vector<4x256xf32> -> vector<4x256xf32>
    %155 = arith.addf %144, %154 : vector<4x256xf32>
    %156 = vector.extract_strided_slice %130 {offsets = [0, 241], sizes = [4, 15], strides = [1, 1]} : vector<4x256xf32> to vector<4x15xf32>
    %157 = vector.extract_strided_slice %130 {offsets = [0, 0], sizes = [4, 241], strides = [1, 1]} : vector<4x256xf32> to vector<4x241xf32>
    %158 = tpu.concatenate %156, %157 in 1 : vector<4x15xf32>, vector<4x241xf32> -> vector<4x256xf32>
    %c2_66 = arith.constant 2 : index
    %c0_67 = arith.constant 0 : index
    %c0_68 = arith.constant 0 : index
    %159 = vector.load %arg2[%c2_66, %c0_67, %c0_68] : memref<9x1x256xf32, #tpu.memory_space<vmem>>, vector<1x1x256xf32>
    %160 = vector.shape_cast %159 : vector<1x1x256xf32> to vector<1x256xf32>
    %161 = vector.broadcast %160 : vector<1x256xf32> to vector<4x256xf32>
    %162 = arith.mulf %158, %161 : vector<4x256xf32>
    %163 = vector.extract_strided_slice %132 {offsets = [2, 0, 0], sizes = [1, 4, 4], strides = [1, 1, 1]} : vector<9x4x4xf32> to vector<1x4x4xf32>
    %164 = vector.shape_cast %163 : vector<1x4x4xf32> to vector<4x4xf32>
    %cst_69 = arith.constant dense<0.000000e+00> : vector<4x256xf32>
    %165 = tpu.matmul %164, %162, %cst_69 {dimension_numbers = #tpu.dot_dimension_numbers<[1], [0], [0], [1], [0, 0, 1, 1], [], []>} : vector<4x4xf32>, vector<4x256xf32>, vector<4x256xf32> -> vector<4x256xf32>
    %166 = arith.addf %155, %165 : vector<4x256xf32>
    %167 = vector.extract_strided_slice %130 {offsets = [0, 255], sizes = [4, 1], strides = [1, 1]} : vector<4x256xf32> to vector<4x1xf32>
    %168 = vector.extract_strided_slice %130 {offsets = [0, 0], sizes = [4, 255], strides = [1, 1]} : vector<4x256xf32> to vector<4x255xf32>
    %169 = tpu.concatenate %167, %168 in 1 : vector<4x1xf32>, vector<4x255xf32> -> vector<4x256xf32>
    %c3_70 = arith.constant 3 : index
    %c0_71 = arith.constant 0 : index
    %c0_72 = arith.constant 0 : index
    %170 = vector.load %arg2[%c3_70, %c0_71, %c0_72] : memref<9x1x256xf32, #tpu.memory_space<vmem>>, vector<1x1x256xf32>
    %171 = vector.shape_cast %170 : vector<1x1x256xf32> to vector<1x256xf32>
    %172 = vector.broadcast %171 : vector<1x256xf32> to vector<4x256xf32>
    %173 = arith.mulf %169, %172 : vector<4x256xf32>
    %174 = vector.extract_strided_slice %132 {offsets = [3, 0, 0], sizes = [1, 4, 4], strides = [1, 1, 1]} : vector<9x4x4xf32> to vector<1x4x4xf32>
    %175 = vector.shape_cast %174 : vector<1x4x4xf32> to vector<4x4xf32>
    %cst_73 = arith.constant dense<0.000000e+00> : vector<4x256xf32>
    %176 = tpu.matmul %175, %173, %cst_73 {dimension_numbers = #tpu.dot_dimension_numbers<[1], [0], [0], [1], [0, 0, 1, 1], [], []>} : vector<4x4xf32>, vector<4x256xf32>, vector<4x256xf32> -> vector<4x256xf32>
    %177 = arith.addf %166, %176 : vector<4x256xf32>
    %178 = vector.extract_strided_slice %132 {offsets = [4, 0, 0], sizes = [1, 4, 4], strides = [1, 1, 1]} : vector<9x4x4xf32> to vector<1x4x4xf32>
    %179 = vector.shape_cast %178 : vector<1x4x4xf32> to vector<4x4xf32>
    %cst_74 = arith.constant dense<0.000000e+00> : vector<4x256xf32>
    %180 = tpu.matmul %179, %130, %cst_74 {dimension_numbers = #tpu.dot_dimension_numbers<[1], [0], [0], [1], [0, 0, 1, 1], [], []>} : vector<4x4xf32>, vector<4x256xf32>, vector<4x256xf32> -> vector<4x256xf32>
    %181 = arith.addf %177, %180 : vector<4x256xf32>
    %182 = vector.extract_strided_slice %130 {offsets = [0, 1], sizes = [4, 255], strides = [1, 1]} : vector<4x256xf32> to vector<4x255xf32>
    %183 = vector.extract_strided_slice %130 {offsets = [0, 0], sizes = [4, 1], strides = [1, 1]} : vector<4x256xf32> to vector<4x1xf32>
    %184 = tpu.concatenate %182, %183 in 1 : vector<4x255xf32>, vector<4x1xf32> -> vector<4x256xf32>
    %c5_75 = arith.constant 5 : index
    %c0_76 = arith.constant 0 : index
    %c0_77 = arith.constant 0 : index
    %185 = vector.load %arg2[%c5_75, %c0_76, %c0_77] : memref<9x1x256xf32, #tpu.memory_space<vmem>>, vector<1x1x256xf32>
    %186 = vector.shape_cast %185 : vector<1x1x256xf32> to vector<1x256xf32>
    %187 = vector.broadcast %186 : vector<1x256xf32> to vector<4x256xf32>
    %188 = arith.mulf %184, %187 : vector<4x256xf32>
    %189 = vector.extract_strided_slice %132 {offsets = [5, 0, 0], sizes = [1, 4, 4], strides = [1, 1, 1]} : vector<9x4x4xf32> to vector<1x4x4xf32>
    %190 = vector.shape_cast %189 : vector<1x4x4xf32> to vector<4x4xf32>
    %cst_78 = arith.constant dense<0.000000e+00> : vector<4x256xf32>
    %191 = tpu.matmul %190, %188, %cst_78 {dimension_numbers = #tpu.dot_dimension_numbers<[1], [0], [0], [1], [0, 0, 1, 1], [], []>} : vector<4x4xf32>, vector<4x256xf32>, vector<4x256xf32> -> vector<4x256xf32>
    %192 = arith.addf %181, %191 : vector<4x256xf32>
    %193 = vector.extract_strided_slice %130 {offsets = [0, 15], sizes = [4, 241], strides = [1, 1]} : vector<4x256xf32> to vector<4x241xf32>
    %194 = vector.extract_strided_slice %130 {offsets = [0, 0], sizes = [4, 15], strides = [1, 1]} : vector<4x256xf32> to vector<4x15xf32>
    %195 = tpu.concatenate %193, %194 in 1 : vector<4x241xf32>, vector<4x15xf32> -> vector<4x256xf32>
    %c6_79 = arith.constant 6 : index
    %c0_80 = arith.constant 0 : index
    %c0_81 = arith.constant 0 : index
    %196 = vector.load %arg2[%c6_79, %c0_80, %c0_81] : memref<9x1x256xf32, #tpu.memory_space<vmem>>, vector<1x1x256xf32>
    %197 = vector.shape_cast %196 : vector<1x1x256xf32> to vector<1x256xf32>
    %198 = vector.broadcast %197 : vector<1x256xf32> to vector<4x256xf32>
    %199 = arith.mulf %195, %198 : vector<4x256xf32>
    %200 = vector.extract_strided_slice %132 {offsets = [6, 0, 0], sizes = [1, 4, 4], strides = [1, 1, 1]} : vector<9x4x4xf32> to vector<1x4x4xf32>
    %201 = vector.shape_cast %200 : vector<1x4x4xf32> to vector<4x4xf32>
    %cst_82 = arith.constant dense<0.000000e+00> : vector<4x256xf32>
    %202 = tpu.matmul %201, %199, %cst_82 {dimension_numbers = #tpu.dot_dimension_numbers<[1], [0], [0], [1], [0, 0, 1, 1], [], []>} : vector<4x4xf32>, vector<4x256xf32>, vector<4x256xf32> -> vector<4x256xf32>
    %203 = arith.addf %192, %202 : vector<4x256xf32>
    %204 = vector.extract_strided_slice %130 {offsets = [0, 16], sizes = [4, 240], strides = [1, 1]} : vector<4x256xf32> to vector<4x240xf32>
    %205 = vector.extract_strided_slice %130 {offsets = [0, 0], sizes = [4, 16], strides = [1, 1]} : vector<4x256xf32> to vector<4x16xf32>
    %206 = tpu.concatenate %204, %205 in 1 : vector<4x240xf32>, vector<4x16xf32> -> vector<4x256xf32>
    %c7_83 = arith.constant 7 : index
    %c0_84 = arith.constant 0 : index
    %c0_85 = arith.constant 0 : index
    %207 = vector.load %arg2[%c7_83, %c0_84, %c0_85] : memref<9x1x256xf32, #tpu.memory_space<vmem>>, vector<1x1x256xf32>
    %208 = vector.shape_cast %207 : vector<1x1x256xf32> to vector<1x256xf32>
    %209 = vector.broadcast %208 : vector<1x256xf32> to vector<4x256xf32>
    %210 = arith.mulf %206, %209 : vector<4x256xf32>
    %211 = vector.extract_strided_slice %132 {offsets = [7, 0, 0], sizes = [1, 4, 4], strides = [1, 1, 1]} : vector<9x4x4xf32> to vector<1x4x4xf32>
    %212 = vector.shape_cast %211 : vector<1x4x4xf32> to vector<4x4xf32>
    %cst_86 = arith.constant dense<0.000000e+00> : vector<4x256xf32>
    %213 = tpu.matmul %212, %210, %cst_86 {dimension_numbers = #tpu.dot_dimension_numbers<[1], [0], [0], [1], [0, 0, 1, 1], [], []>} : vector<4x4xf32>, vector<4x256xf32>, vector<4x256xf32> -> vector<4x256xf32>
    %214 = arith.addf %203, %213 : vector<4x256xf32>
    %215 = vector.extract_strided_slice %130 {offsets = [0, 17], sizes = [4, 239], strides = [1, 1]} : vector<4x256xf32> to vector<4x239xf32>
    %216 = vector.extract_strided_slice %130 {offsets = [0, 0], sizes = [4, 17], strides = [1, 1]} : vector<4x256xf32> to vector<4x17xf32>
    %217 = tpu.concatenate %215, %216 in 1 : vector<4x239xf32>, vector<4x17xf32> -> vector<4x256xf32>
    %c8_87 = arith.constant 8 : index
    %c0_88 = arith.constant 0 : index
    %c0_89 = arith.constant 0 : index
    %218 = vector.load %arg2[%c8_87, %c0_88, %c0_89] : memref<9x1x256xf32, #tpu.memory_space<vmem>>, vector<1x1x256xf32>
    %219 = vector.shape_cast %218 : vector<1x1x256xf32> to vector<1x256xf32>
    %220 = vector.broadcast %219 : vector<1x256xf32> to vector<4x256xf32>
    %221 = arith.mulf %217, %220 : vector<4x256xf32>
    %222 = vector.extract_strided_slice %132 {offsets = [8, 0, 0], sizes = [1, 4, 4], strides = [1, 1, 1]} : vector<9x4x4xf32> to vector<1x4x4xf32>
    %223 = vector.shape_cast %222 : vector<1x4x4xf32> to vector<4x4xf32>
    %cst_90 = arith.constant dense<0.000000e+00> : vector<4x256xf32>
    %224 = tpu.matmul %223, %221, %cst_90 {dimension_numbers = #tpu.dot_dimension_numbers<[1], [0], [0], [1], [0, 0, 1, 1], [], []>} : vector<4x4xf32>, vector<4x256xf32>, vector<4x256xf32> -> vector<4x256xf32>
    %225 = arith.addf %214, %224 : vector<4x256xf32>
    %226 = vector.broadcast %134 : vector<4x1xf32> to vector<4x256xf32>
    %227 = arith.addf %225, %226 : vector<4x256xf32>
    %228 = arith.negf %227 : vector<4x256xf32>
    %229 = math.exp %228 : vector<4x256xf32>
    %cst_91 = arith.constant 1.000000e+00 : f32
    %230 = vector.broadcast %cst_91 : f32 to vector<4x256xf32>
    %231 = arith.addf %230, %229 : vector<4x256xf32>
    %232 = arith.divf %230, %231 : vector<4x256xf32>
    %233 = arith.mulf %227, %232 : vector<4x256xf32>
    %c0_92 = arith.constant 0 : index
    %c0_93 = arith.constant 0 : index
    %234 = vector.load %arg10[%c0_92, %c0_93] : memref<8x1xf32, #tpu.memory_space<vmem>>, vector<8x1xf32>
    %c0_94 = arith.constant 0 : index
    %c0_95 = arith.constant 0 : index
    %c0_96 = arith.constant 0 : index
    %235 = vector.load %arg9[%c0_94, %c0_95, %c0_96] : memref<3x8x4xf32, #tpu.memory_space<vmem>>, vector<1x8x4xf32>
    %236 = vector.shape_cast %235 : vector<1x8x4xf32> to vector<8x4xf32>
    %cst_97 = arith.constant dense<0.000000e+00> : vector<8x256xf32>
    %237 = tpu.matmul %236, %14, %cst_97 {dimension_numbers = #tpu.dot_dimension_numbers<[1], [0], [0], [1], [0, 0, 1, 1], [], []>} : vector<8x4xf32>, vector<4x256xf32>, vector<8x256xf32> -> vector<8x256xf32>
    %238 = vector.broadcast %234 : vector<8x1xf32> to vector<8x256xf32>
    %239 = arith.addf %238, %237 : vector<8x256xf32>
    %c1_98 = arith.constant 1 : index
    %c0_99 = arith.constant 0 : index
    %c0_100 = arith.constant 0 : index
    %240 = vector.load %arg9[%c1_98, %c0_99, %c0_100] : memref<3x8x4xf32, #tpu.memory_space<vmem>>, vector<1x8x4xf32>
    %241 = vector.shape_cast %240 : vector<1x8x4xf32> to vector<8x4xf32>
    %cst_101 = arith.constant dense<0.000000e+00> : vector<8x256xf32>
    %242 = tpu.matmul %241, %27, %cst_101 {dimension_numbers = #tpu.dot_dimension_numbers<[1], [0], [0], [1], [0, 0, 1, 1], [], []>} : vector<8x4xf32>, vector<4x256xf32>, vector<8x256xf32> -> vector<8x256xf32>
    %243 = arith.addf %239, %242 : vector<8x256xf32>
    %c2_102 = arith.constant 2 : index
    %c0_103 = arith.constant 0 : index
    %c0_104 = arith.constant 0 : index
    %244 = vector.load %arg9[%c2_102, %c0_103, %c0_104] : memref<3x8x4xf32, #tpu.memory_space<vmem>>, vector<1x8x4xf32>
    %245 = vector.shape_cast %244 : vector<1x8x4xf32> to vector<8x4xf32>
    %cst_105 = arith.constant dense<0.000000e+00> : vector<8x256xf32>
    %246 = tpu.matmul %245, %233, %cst_105 {dimension_numbers = #tpu.dot_dimension_numbers<[1], [0], [0], [1], [0, 0, 1, 1], [], []>} : vector<8x4xf32>, vector<4x256xf32>, vector<8x256xf32> -> vector<8x256xf32>
    %247 = arith.addf %243, %246 : vector<8x256xf32>
    %248 = arith.negf %247 : vector<8x256xf32>
    %249 = math.exp %248 : vector<8x256xf32>
    %cst_106 = arith.constant 1.000000e+00 : f32
    %250 = vector.broadcast %cst_106 : f32 to vector<8x256xf32>
    %251 = arith.addf %250, %249 : vector<8x256xf32>
    %252 = arith.divf %250, %251 : vector<8x256xf32>
    %253 = arith.mulf %247, %252 : vector<8x256xf32>
    %c0_107 = arith.constant 0 : index
    %c0_108 = arith.constant 0 : index
    %c0_109 = arith.constant 0 : index
    %254 = vector.load %arg11[%c0_107, %c0_108, %c0_109] : memref<1x8x256xf32, #tpu.memory_space<vmem>>, vector<1x8x256xf32>
    %255 = vector.shape_cast %254 : vector<1x8x256xf32> to vector<8x256xf32>
    %256 = vector.shape_cast %253 : vector<8x256xf32> to vector<1x8x256xf32>
    tpu.vector_store %arg11[%c0_107, %c0_108, %c0_109], %256 {strides = array<i32>} : memref<1x8x256xf32, #tpu.memory_space<vmem>>, vector<1x8x256xf32>,
    return
  }
  func.func @transform_0(%arg0: i32) -> (i32, i32, i32) {
    %c0_i32 = arith.constant 0 : i32
    %c0_i32_0 = arith.constant 0 : i32
    %c0_i32_1 = arith.constant 0 : i32
    return %arg0, %c0_i32, %c0_i32_0 : i32, i32, i32
  }
  func.func @transform_1(%arg0: i32) -> (i32, i32, i32) {
    %c0_i32 = arith.constant 0 : i32
    %c0_i32_0 = arith.constant 0 : i32
    %c0_i32_1 = arith.constant 0 : i32
    %c0_i32_2 = arith.constant 0 : i32
    return %c0_i32, %c0_i32_0, %c0_i32_1 : i32, i32, i32
  }
  func.func @transform_2(%arg0: i32) -> (i32, i32, i32) {
    %c0_i32 = arith.constant 0 : i32
    %c0_i32_0 = arith.constant 0 : i32
    %c0_i32_1 = arith.constant 0 : i32
    %c0_i32_2 = arith.constant 0 : i32
    return %c0_i32, %c0_i32_0, %c0_i32_1 : i32, i32, i32
  }
  func.func @transform_3(%arg0: i32) -> (i32, i32, i32) {
    %c0_i32 = arith.constant 0 : i32
    %c0_i32_0 = arith.constant 0 : i32
    %c0_i32_1 = arith.constant 0 : i32
    %c0_i32_2 = arith.constant 0 : i32
    return %c0_i32, %c0_i32_0, %c0_i32_1 : i32, i32, i32
  }
  func.func @transform_4(%arg0: i32) -> (i32, i32, i32, i32) {
    %c0_i32 = arith.constant 0 : i32
    %c0_i32_0 = arith.constant 0 : i32
    %c0_i32_1 = arith.constant 0 : i32
    %c0_i32_2 = arith.constant 0 : i32
    %c0_i32_3 = arith.constant 0 : i32
    return %c0_i32, %c0_i32_0, %c0_i32_1, %c0_i32_2 : i32, i32, i32, i32
  }
  func.func @transform_5(%arg0: i32) -> (i32, i32, i32) {
    %c0_i32 = arith.constant 0 : i32
    %c0_i32_0 = arith.constant 0 : i32
    %c0_i32_1 = arith.constant 0 : i32
    %c0_i32_2 = arith.constant 0 : i32
    return %c0_i32, %c0_i32_0, %c0_i32_1 : i32, i32, i32
  }
  func.func @transform_6(%arg0: i32) -> (i32, i32, i32, i32) {
    %c0_i32 = arith.constant 0 : i32
    %c0_i32_0 = arith.constant 0 : i32
    %c0_i32_1 = arith.constant 0 : i32
    %c0_i32_2 = arith.constant 0 : i32
    %c0_i32_3 = arith.constant 0 : i32
    return %c0_i32, %c0_i32_0, %c0_i32_1, %c0_i32_2 : i32, i32, i32, i32
  }
  func.func @transform_7(%arg0: i32) -> (i32, i32, i32) {
    %c0_i32 = arith.constant 0 : i32
    %c0_i32_0 = arith.constant 0 : i32
    %c0_i32_1 = arith.constant 0 : i32
    %c0_i32_2 = arith.constant 0 : i32
    return %c0_i32, %c0_i32_0, %c0_i32_1 : i32, i32, i32
  }
  func.func @transform_8(%arg0: i32) -> (i32, i32, i32) {
    %c0_i32 = arith.constant 0 : i32
    %c0_i32_0 = arith.constant 0 : i32
    %c0_i32_1 = arith.constant 0 : i32
    %c0_i32_2 = arith.constant 0 : i32
    return %c0_i32, %c0_i32_0, %c0_i32_1 : i32, i32, i32
  }
  func.func @transform_9(%arg0: i32) -> (i32, i32) {
    %c0_i32 = arith.constant 0 : i32
    %c0_i32_0 = arith.constant 0 : i32
    %c0_i32_1 = arith.constant 0 : i32
    return %c0_i32, %c0_i32_0 : i32, i32
  }
  func.func @transform_10(%arg0: i32) -> (i32, i32, i32) {
    %c0_i32 = arith.constant 0 : i32
    %c0_i32_0 = arith.constant 0 : i32
    %c0_i32_1 = arith.constant 0 : i32
    return %arg0, %c0_i32, %c0_i32_0 : i32, i32, i32
  }
}

</mosaic_0001>

<bundles_post_ra>
// kernel: tpu_custom_call.1
= control target key start
LH: loop header
LB: loop body
LE: loop exit
PB: predicated region body
PF: predicated region fallthrough
CT: control target
= control target key end

     0   :  { %15 = vsyncpa [#allocation3], 0  ;;  %s3581_s0 = inlined_call_operand.vmem [shape: f32[2,4,256], index: 0, kind: input, shape index: {}]   ;;  %s3582_s1 = inlined_call_operand.vmem [shape: f32[9,1,256], index: 1, kind: input, shape index: {}]   ;;  %s3583_s2 = inlined_call_operand.vmem [shape: f32[2,4,4], index: 2, kind: input, shape index: {}]   ;;  %s3584_s3 = inlined_call_operand.vmem [shape: f32[2,4,1], index: 3, kind: input, shape index: {}]   ;;  %s3585_s4 = inlined_call_operand.vmem [shape: f32[1,9,4,4], index: 4, kind: input, shape index: {}]   ;;  %s3586_s5 = inlined_call_operand.vmem [shape: f32[1,4,1], index: 5, kind: input, shape index: {}]   ;;  %s3587_s6 = inlined_call_operand.vmem [shape: f32[1,9,4,4], index: 6, kind: input, shape index: {}]   ;;  %s3588_s7 = inlined_call_operand.vmem [shape: f32[1,4,1], index: 7, kind: input, shape index: {}]   ;;  %s3589_s8 = inlined_call_operand.vmem [shape: f32[3,8,4], index: 8, kind: input, shape index: {}]   ;;  %s3590_s9 = inlined_call_operand.vmem [shape: f32[8,1], index: 9, kind: input, shape index: {}]   ;;  %s3591_s10 = inlined_call_operand.hbm [shape: f32[2,8,256], index: 10, kind: output, shape index: {}]  }
   0x1   :  { %17 = vsyncpa [#allocation3 + $0x1], 0  ;;  %s3081_s13 = smov 0   ;;  %s3083_s14 = smov 0  }
   0x2   :  { %s3085_s15 = smov 0   ;;  %s3087_s16 = smov 0  }
   0x3 LB: > { %s3102_s17 = sadd.s32 4294967295, %s3013_s16   ;;  %s2717_s18 = sadd.s32 4294967294, %s3013_s16   ;;  %s3013_s16 = sphi %s3087_s16, %s3600_s16   ;;  %s3009_s15 = sphi %s3085_s15, %s3599_s15   ;;  %s3005_s14 = sphi %s3083_s14, %s3598_s14   ;;  %s3001_s13 = sphi %s3081_s13, %s3597_s13  }
   0x4   : > { %s3106_s19 = sadd.s32 1, %s3013_s16   ;;  %s245_s20 = sadd.s32 1, %s3009_s15 }
   0x5   : > { %s242_s21 = ssub.s32 %s3013_s16, %s3106_s19  ;;  %p255_p0 = scmp.ne.s32.totalorder %s3009_s15, %s3005_s14 }
   0x6   : > { %p243_p1 = scmp.eq.s32.totalorder %s242_s21, 0  ;;  %p256_p2 = scmp.eq.s32.totalorder %s3102_s17, 1 }
   0x7   : > { %p261_p3 = scmp.ne.s32.totalorder %s3005_s14, %s3001_s13  ;;  %p262_p4 = scmp.eq.s32.totalorder %s2717_s18, 1 }
   0x8   : > { %s3117_s22 = scalar_select %p243_p1, %s3009_s15, %s245_s20  }
   0x9   : > { %p3119_p5 = por %p256_p2, %p255_p0  ;;  %p3123_p6 = por %p262_p4, %p261_p3 }
   0xa   : > { %p2720_p7 = scmp.ge.s32.totalorder %s3013_s16, 1  ;;  %p315_p8 = scmp.lt.s32.totalorder %s3013_s16, 3 }
   0xc   : > { %p316_p9 = pnand %p2720_p7, %p315_p8 }
   0xd   : > { %p353_p10 = scmp.lt.s32.totalorder (!%p316_p9), %s3102_s17, 1  ;;  %v3015_v0 = vmov (!%p316_p9), 0.0   ;;  %v2730_v1 = vld [vmem:[%s3584_s3 + $0x4] sm:$0xf] (!%p316_p9)  ;;  %v3016_v2 = vmov (!%p316_p9), 0   ;;  %vm372_vm0 = vcmask (!%p316_p9), 1043456   ;;  %v583_v25 = vlaneseq (!%p316_p9) }
   0xe   : > { %319 = sbr.rel (%p316_p9) target bundleno = 1390 (0x56e), region = 60  ;;  %441 = vmatprep.mubr.f32.mxu1 (!%p316_p9), %v3015_v0  ;;  %693 = vmatprep.mubr.f32.mxu0 (!%p316_p9), %v3015_v0  ;;  %v359_v5 = vld [vmem:[%s3583_s2] sm:$0xf] (!%p316_p9)  ;;  %vm368_vm1 = vcmask (!%p316_p9), 31744   ;;  %v2729_v6 = vld [vmem:[%s3583_s2 + $0x4] sm:$0xf] (!%p316_p9) }
   0xf   : > { %2908 = vset.pattern.permute.xlu0 (!%p316_p9), %v3016_v2  ;;  %2909 = vset.pattern.permute.xlu1 (!%p316_p9), %v3016_v2  ;;  %s3017_s25 = smov (!%p316_p9), 16   ;;  %s3018_s26 = smov (!%p316_p9), 17   ;;  %v568_v24 = vld [vmem:[%s3586_s5] sm:$0xf] (!%p316_p9)  ;;  %v584_v26 = vshrl.u32 (!%p316_p9), %v583_v25, 7  ;;  %vm600_vm2 = vcmask (!%p316_p9), 130048  }
  0x10   : > { %468 = vperm.xlu0 (!%p316_p9), %2908, %v2730_v1   ;;  %s3021_s29 = smov (!%p316_p9), 127   ;;  %s3022_s30 = smov (!%p316_p9), 113   ;;  %v2736_v29 = vld [vmem:[%s3582_s1 + $0x2] sm:$0x3] (!%p316_p9)  ;;  %v581_v33 = vld [vmem:[%s3582_s1] sm:$0x3] (!%p316_p9) }
  0x11   : > { %s3024_s12 = smov (!%p316_p9), 111   ;;  %v3196_v27 = vsub.s32 (!%p316_p9), 0, %v584_v26  ;;  %v3198_v28 = vsub.s32 (!%p316_p9), 1, %v584_v26  ;;  %vm576_vm3 = vcmask (!%p316_p9), 138240   ;;  %v560_v42 = vld [vmem:[%s3585_s4 + $0x4] sm:$0xf] (!%p316_p9) }
  0x12   : > { %v2743_v43 = vld [vmem:[%s3582_s1 + $0x4] sm:$0x3] (!%p316_p9)  ;;  %vm785_vm4 = vcmask (!%p316_p9), 121856   ;;  %v2747_v51 = vld [vmem:[%s3582_s1 + $0x6] sm:$0x3] (!%p316_p9)  ;;  %vm892_vm5 = vcmask (!%p316_p9), 7168  }
  0x13   : > { %v3204_v30 = vrot.slane (!%p316_p9), %v2736_v29, %v3196_v27  ;;  %v3207_v31 = vrot.slane (!%p316_p9), %v2736_v29, %v3198_v28  ;;  %v3216_v38 = vrot.slane (!%p316_p9), %v581_v33, %v3196_v27  ;;  %v3219_v39 = vrot.slane (!%p316_p9), %v581_v33, %v3198_v28  ;;  %v559_v59 = vld [vmem:[%s3585_s4] sm:$0xf] (!%p316_p9)  ;;  %v2762_v26 = vld [vmem:[%s3582_s1 + $0xe] sm:$0x3] (!%p316_p9) }
  0x14   : > { %v3236_v49 = vrot.slane (!%p316_p9), %v2743_v43, %v3198_v28  ;;  %v3244_v53 = vrot.slane (!%p316_p9), %v2743_v43, %v3196_v27  ;;  %v3251_v57 = vrot.slane (!%p316_p9), %v2747_v51, %v3198_v28  ;;  %v3265_v1 = vrot.slane (!%p316_p9), %v2747_v51, %v3196_v27 }
  0x15   : > { %s354_s27 = scalar_select %p353_p10, %s3102_s17, 1  ;;  %vm1078_vm6 = vcmask 1039360   ;;  %vm1185_vm7 = vcmask 924672   ;;  %vm1292_vm8 = vcmask 916480   ;;  %vm1399_vm9 = vcmask 908288  }
  0x17   : > { %s2819_s28 = sshll.u32 %s354_s27, 3  ;;  %s3019_s27 = smov 15  }
  0x18   : > { %s357_s11 = scalar_lea.vmem %s3581_s0, %s2819_s28  ;;  %s3020_s28 = smov 1  }
  0x19   : > { %v358_v3 = vld [vmem:[%s357_s11] sm:$0xff]  ;;  %s3592_s11 = smov 112  }
  0x1a   : > { %v367_v4 = vcombine.high %v358_v3, %v358_v3 }
  0x1c   : > { %2724 = vmatprep.subr.msk.mxu1 %vm372_vm0, %v367_v4 }
  0x1d   : > { %2725 = vmatpush1.msk.msra.mxu1 %vm372_vm0, %v358_v3 }
  0x1e   : > { %2726 = vmatmul.mubr.msk.f32.vlgmr.msra.gmra.mrb[0].mxu1 %vm368_vm1, %v359_v5  ;;  %2731 = vmatprep.subr.msk.mxu1 %vm372_vm0, %v367_v4  ;;  %v2754_v5 = vld [vmem:[%s3582_s1 + $0xa] sm:$0x3] }
  0x1f   : > { %2732 = vmatpush1.msk.msra.mxu1 %vm372_vm0, %v358_v3  ;;  %538 = vmatprep.mubr.f32.mxu1 %v3015_v0  ;;  %v561_v3 = vld [vmem:[%s3585_s4 + $0x8] sm:$0xf] }
  0x22   : > { %2733 = vmatmul.mubr.msk.f32.vlgmr.msra.gmra.mrb[2].mxu1 %vm368_vm1, %v2729_v6 }
  0x23   : > { %1630 = vmatprep.mubr.f32.mxu1 %v3015_v0 }
  0x8f   : > { %v469_v9 = vpop.permute.xlu0 %468 }
  0xf1   : > { %v3153_v7 = vpop.f32.mrb[0].mxu1 }
  0xf2   : > { %v3155_v8 = vpop.f32.mrb[1].mxu1 }
  0xf5   : > { %v540_v10 = vpop.f32.mrb[2].mxu1 }
  0xf6   : > { %v541_v11 = vadd.f32 %v540_v10, %v469_v9  ;;  %v542_v12 = vpop.f32.mrb[3].mxu1  ;;  %v3281_v10 = vrot.slane %v2754_v5, %v3198_v28 }
  0xf7   : > { %v543_v13 = vadd.f32 %v542_v12, %v469_v9  ;;  %v562_v12 = vld [vmem:[%s3585_s4 + $0xc] sm:$0xf] }
  0xf8   : > { %v2734_v14 = vmul.f32 -1.442695, %v541_v11 }
  0xf9   : > { %v2735_v15 = vmul.f32 -1.442695, %v543_v13 }
  0xfa   : > { %2911 = vpow2.f32 %v2734_v14  ;;  %v2758_v14 = vld [vmem:[%s3582_s1 + $0xc] sm:$0x3] }
  0xfb   : > { %2913 = vpow2.f32 %v2735_v15  ;;  %v3317_v33 = vrot.slane %v2758_v14, %v3196_v27 }
 0x104   : > { %v2912_v16 = vpop.eup %2911 }
 0x105   : > { %v2914_v17 = vpop.eup %2913  ;;  %v551_v18 = vadd.f32 1.0, %v2912_v16 }
 0x106   : > { %v552_v19 = vadd.f32 1.0, %v2914_v17  ;;  %v3297_v17 = vrot.slane %v2754_v5, %v3196_v27 }
 0x107   : > { %2915 = vrcp.f32 %v551_v18 }
 0x108   : > { %2917 = vrcp.f32 %v552_v19  ;;  %v3301_v19 = vrot.slane %v2758_v14, %v3198_v28  ;;  %v1532_v14 = vld [vmem:[%s3588_s7] sm:$0xf] }
 0x111   : > { %v2916_v20 = vpop.eup %2915 }
 0x112   : > { %v2918_v21 = vpop.eup %2917  ;;  %v3157_v22 = vmul.f32 %v2916_v20, %v541_v11 }
 0x113   : > { %v3159_v23 = vmul.f32 %v2918_v21, %v543_v13  ;;  %v563_v21 = vld [vmem:[%s3585_s4 + $0x10] sm:$0xf] }
 0x114   : > { %598 = vrot.lane.b32.xlu1 %v3157_v22, %s3017_s25 }
 0x115   : > { %595 = vrot.lane.b32.xlu0 %v3159_v23, %s3017_s25 }
 0x118   : > { %570 = vrot.lane.b32.xlu1 %v3159_v23, %s3018_s26 }
 0x119   : > { %574 = vrot.lane.b32.xlu0 %v3157_v22, %s3018_s26 }
 0x11c   : > { %780 = vrot.lane.b32.xlu1 %v3159_v23, %s3019_s27 }
 0x11d   : > { %783 = vrot.lane.b32.xlu0 %v3157_v22, %s3019_s27 }
 0x120   : > { %887 = vrot.lane.b32.xlu1 %v3159_v23, %s3020_s28 }
 0x121   : > { %890 = vrot.lane.b32.xlu0 %v3157_v22, %s3020_s28 }
 0x124   : > { %1074 = vrot.lane.b32.xlu1 %v3157_v22, %s3021_s29 }
 0x125   : > { %1076 = vrot.lane.b32.xlu0 %v3159_v23, %s3021_s29 }
 0x128   : > { %1181 = vrot.lane.b32.xlu1 %v3157_v22, %s3022_s30 }
 0x129   : > { %1183 = vrot.lane.b32.xlu0 %v3159_v23, %s3022_s30 }
 0x12c   : > { %1288 = vrot.lane.b32.xlu1 %v3157_v22, %s3592_s11 }
 0x12d   : > { %1290 = vrot.lane.b32.xlu0 %v3159_v23, %s3592_s11  ;;  %s350_s11 = sand.u32 1, %s3005_s14  }
 0x12e   : > { %s2721_s21 = sshll.u32 %s350_s11, 4  ;;  %s2644_s18 = scalar_lea.sflag [#allocation3], %s350_s11 }
 0x130   : > { %1395 = vrot.lane.b32.xlu1 %v3157_v22, %s3024_s12 }
 0x131   : > { %1397 = vrot.lane.b32.xlu0 %v3159_v23, %s3024_s12 }
 0x134   : > { %1504 = vperm.xlu1 %2909, %v568_v24  }
 0x186   : > { %v599_v32 = vpop.permute.xlu1 %598 }
 0x187   : > { %v596_v34 = vpop.permute.xlu0 %595 }
 0x188   : > { %v601_v35 = vsel %vm600_vm2, %v599_v32, %v596_v34  ;;  %v604_v36 = vsel %vm600_vm2, %v596_v34, %v599_v32 }
 0x189   : > { %v618_v37 = vmul.f32 %v3204_v30, %v604_v36  ;;  %v619_v40 = vmul.f32 %v3207_v31, %v601_v35  ;;  %v3321_v35 = vrot.slane %v2762_v26, %v3198_v28 }
 0x18a   : > { %v571_v41 = vpop.permute.xlu1 %570 }
 0x18b   : > { %v575_v44 = vpop.permute.xlu0 %574  ;;  %2737 = vmatprep.subr.msk.mxu0 %vm372_vm0, %v619_v40 }
 0x18c   : > { %v577_v45 = vsel %vm576_vm3, %v575_v44, %v571_v41  ;;  %v580_v46 = vsel %vm576_vm3, %v571_v41, %v575_v44  ;;  %2738 = vmatpush1.msk.msra.mxu0 %vm372_vm0, %v618_v37  ;;  %v564_v37 = vld [vmem:[%s3585_s4 + $0x14] sm:$0xf] }
 0x18d   : > { %v593_v47 = vmul.f32 %v3216_v38, %v580_v46  ;;  %v594_v48 = vmul.f32 %v3219_v39, %v577_v45  ;;  %2739 = vmatmul.mubr.msk.f32.vlgmr.msra.gmra.mrb[0].mxu0 %vm368_vm1, %v560_v42  ;;  %v2766_v42 = vld [vmem:[%s3582_s1 + $0x10] sm:$0x3]  ;;  %v3337_v45 = vrot.slane %v2762_v26, %v3196_v27 }
 0x18e   : > { %v781_v50 = vpop.permute.xlu1 %780  ;;  %773 = vmatprep.mubr.f32.mxu0 %v3015_v0 }
 0x18f   : > { %v784_v52 = vpop.permute.xlu0 %783  ;;  %2740 = vmatprep.subr.msk.mxu0 %vm372_vm0, %v594_v48 }
 0x190   : > { %v786_v54 = vsel %vm785_vm4, %v784_v52, %v781_v50  ;;  %2741 = vmatpush1.msk.msra.mxu0 %vm372_vm0, %v593_v47  ;;  %v789_v55 = vsel %vm785_vm4, %v781_v50, %v784_v52  ;;  %v3341_v47 = vrot.slane %v2766_v42, %v3198_v28  ;;  %v565_v50 = vld [vmem:[%s3585_s4 + $0x18] sm:$0xf]  ;;  %v3354_v28 = vrot.slane %v2766_v42, %v3196_v27 }
 0x191   : > { %v804_v56 = vmul.f32 %v3236_v49, %v786_v54  ;;  %v803_v61 = vmul.f32 %v3244_v53, %v789_v55  ;;  %v566_v55 = vld [vmem:[%s3585_s4 + $0x1c] sm:$0xf] }
 0x192   : > { %v888_v58 = vpop.permute.xlu1 %887 }
 0x193   : > { %v891_v60 = vpop.permute.xlu0 %890  ;;  %2744 = vmatprep.subr.msk.mxu0 %vm372_vm0, %v804_v56 }
 0x194   : > { %v893_v62 = vsel %vm892_vm5, %v891_v60, %v888_v58  ;;  %v896_v2 = vsel %vm892_vm5, %v888_v58, %v891_v60  ;;  %v567_v58 = vld [vmem:[%s3585_s4 + $0x20] sm:$0xf] }
 0x195   : > { %v911_v63 = vmul.f32 %v3251_v57, %v893_v62  ;;  %2742 = vmatmul.mubr.msk.f32.vlgmr.msra.gmra.mrb[0].mxu0 %vm368_vm1, %v559_v59  ;;  %v910_v4 = vmul.f32 %v3265_v1, %v896_v2 }
 0x196   : > { %2745 = vmatpush1.msk.msra.mxu0 %vm372_vm0, %v803_v61  ;;  %878 = vmatprep.mubr.f32.mxu0 %v3015_v0  ;;  %v1075_v6 = vpop.permute.xlu1 %1074 }
 0x197   : > { %2748 = vmatprep.subr.msk.mxu0 %vm372_vm0, %v911_v63  ;;  %v1077_v9 = vpop.permute.xlu0 %1076 }
 0x198   : > { %v1083_v11 = vsel %vm1078_vm6, %v1077_v9, %v1075_v6  ;;  %v1079_v18 = vsel %vm1078_vm6, %v1075_v6, %v1077_v9 }
 0x199   : > { %v1098_v13 = vmul.f32 %v3281_v10, %v1083_v11  ;;  %v1097_v24 = vmul.f32 %v3297_v17, %v1079_v18 }
 0x19a   : > { %v1182_v15 = vpop.permute.xlu1 %1181 }
 0x19b   : > { %v1184_v16 = vpop.permute.xlu0 %1183 }
 0x19c   : > { %v1190_v20 = vsel %vm1185_vm7, %v1184_v16, %v1182_v15  ;;  %v1186_v34 = vsel %vm1185_vm7, %v1182_v15, %v1184_v16  ;;  %v360_v15 = vld [vmem:[%s3584_s3] sm:$0xf] }
 0x19d   : > { %2746 = vmatmul.mubr.msk.f32.vlgmr.msra.gmra.mrb[0].mxu0 %vm368_vm1, %v561_v3  ;;  %v1205_v25 = vmul.f32 %v3301_v19, %v1190_v20  ;;  %v1204_v40 = vmul.f32 %v3317_v33, %v1186_v34  ;;  %v2376_v16 = vld [vmem:[%s3590_s9] sm:$0xff] }
 0x19e   : > { %2749 = vmatpush1.msk.msra.mxu0 %vm372_vm0, %v910_v4  ;;  %985 = vmatprep.mubr.f32.mxu0 %v3015_v0  ;;  %v1289_v29 = vpop.permute.xlu1 %1288 }
 0x19f   : > { %2751 = vmatprep.subr.msk.mxu0 %vm372_vm0, %v3159_v23  ;;  %v1291_v32 = vpop.permute.xlu0 %1290 }
 0x1a0   : > { %v1297_v36 = vsel %vm1292_vm8, %v1291_v32, %v1289_v29  ;;  %v1293_v46 = vsel %vm1292_vm8, %v1289_v29, %v1291_v32  ;;  %v1524_v32 = vld [vmem:[%s3587_s6 + $0x4] sm:$0xf] }
 0x1a1   : > { %v1312_v41 = vmul.f32 %v3321_v35, %v1297_v36  ;;  %v1311_v51 = vmul.f32 %v3337_v45, %v1293_v46 }
 0x1a2   : > { %v1396_v43 = vpop.permute.xlu1 %1395 }
 0x1a3   : > { %v1398_v44 = vpop.permute.xlu0 %1397 }
 0x1a4   : > { %v1404_v48 = vsel %vm1399_vm9, %v1398_v44, %v1396_v43  ;;  %v1400_v54 = vsel %vm1399_vm9, %v1396_v43, %v1398_v44 }
 0x1a5   : > { %2750 = vmatmul.mubr.msk.f32.vlgmr.msra.gmra.mrb[0].mxu0 %vm368_vm1, %v562_v12  ;;  %v1419_v52 = vmul.f32 %v3341_v47, %v1404_v48  ;;  %v1418_v56 = vmul.f32 %v3354_v28, %v1400_v54 }
 0x1a6   : > { %2752 = vmatpush1.msk.msra.mxu0 %vm372_vm0, %v3157_v22  ;;  %1065 = vmatprep.mubr.f32.mxu0 %v3015_v0 }
 0x1a7   : > { %2755 = vmatprep.subr.msk.mxu0 %vm372_vm0, %v1098_v13 }
 0x1ad   : > { %2753 = vmatmul.mubr.msk.f32.vlgmr.msra.gmra.mrb[0].mxu0 %vm368_vm1, %v563_v21 }
 0x1ae   : > { %2756 = vmatpush1.msk.msra.mxu0 %vm372_vm0, %v1097_v24  ;;  %1172 = vmatprep.mubr.f32.mxu0 %v3015_v0 }
 0x1af   : > { %2759 = vmatprep.subr.msk.mxu0 %vm372_vm0, %v1205_v25 }
 0x1b3   : > { %v1505_v27 = vpop.permute.xlu1 %1504 }
 0x1b5   : > { %2757 = vmatmul.mubr.msk.f32.vlgmr.msra.gmra.mrb[0].mxu0 %vm368_vm1, %v564_v37 }
 0x1b6   : > { %2760 = vmatpush1.msk.msra.mxu0 %vm372_vm0, %v1204_v40  ;;  %1279 = vmatprep.mubr.f32.mxu0 %v3015_v0 }
 0x1b7   : > { %2763 = vmatprep.subr.msk.mxu0 %vm372_vm0, %v1312_v41 }
 0x1bd   : > { %2761 = vmatmul.mubr.msk.f32.vlgmr.msra.gmra.mrb[0].mxu0 %vm368_vm1, %v565_v50 }
 0x1be   : > { %2764 = vmatpush1.msk.msra.mxu0 %vm372_vm0, %v1311_v51  ;;  %1386 = vmatprep.mubr.f32.mxu0 %v3015_v0 }
 0x1bf   : > { %2767 = vmatprep.subr.msk.mxu0 %vm372_vm0, %v1419_v52  ;;  %v1525_v52 = vld [vmem:[%s3587_s6 + $0x8] sm:$0xf] }
 0x1c5   : > { %2765 = vmatmul.mubr.msk.f32.vlgmr.msra.gmra.mrb[0].mxu0 %vm368_vm1, %v566_v55 }
 0x1c6   : > { %2768 = vmatpush1.msk.msra.mxu0 %vm372_vm0, %v1418_v56  ;;  %1493 = vmatprep.mubr.f32.mxu0 %v3015_v0  ;;  %v1526_v56 = vld [vmem:[%s3587_s6 + $0xc] sm:$0xf] }
 0x1cd   : > { %2769 = vmatmul.mubr.msk.f32.vlgmr.msra.gmra.mrb[0].mxu0 %vm368_vm1, %v567_v58 }
 0x1ce   : > { %2451 = vmatprep.mubr.f32.mxu0 %v3015_v0 }
 0x2a0   : > { %v1495_v59 = vpop.f32.mrb[0].mxu0 }
 0x2a1   : > { %v1507_v60 = vadd.f32 %v1505_v27, %v1495_v59  ;;  %v1497_v61 = vpop.f32.mrb[1].mxu0 }
 0x2a2   : > { %v1508_v62 = vadd.f32 %v1505_v27, %v1497_v61 }
 0x2a3   : > { %v2770_v63 = vmul.f32 -1.442695, %v1507_v60 }
 0x2a4   : > { %v2771_v2 = vmul.f32 -1.442695, %v1508_v62 }
 0x2a5   : > { %2919 = vpow2.f32 %v2770_v63 }
 0x2a6   : > { %2921 = vpow2.f32 %v2771_v2 }
 0x2af   : > { %v2920_v3 = vpop.eup %2919 }
 0x2b0   : > { %v2922_v4 = vpop.eup %2921  ;;  %v1515_v5 = vadd.f32 1.0, %v2920_v3 }
 0x2b1   : > { %v1516_v6 = vadd.f32 1.0, %v2922_v4 }
 0x2b2   : > { %2923 = vrcp.f32 %v1515_v5 }
 0x2b3   : > { %2925 = vrcp.f32 %v1516_v6 }
 0x2bc   : > { %v2924_v9 = vpop.eup %2923 }
 0x2bd   : > { %v2926_v11 = vpop.eup %2925  ;;  %v3369_v12 = vmul.f32 %v2924_v9, %v1507_v60 }
 0x2be   : > { %v3371_v13 = vmul.f32 %v2926_v11, %v1508_v62  ;;  %v1527_v62 = vld [vmem:[%s3587_s6 + $0x10] sm:$0xf] }
 0x2bf   : > { %1549 = vrot.lane.b32.xlu1 %v3369_v12, %s3017_s25 }
 0x2c0   : > { %1546 = vrot.lane.b32.xlu0 %v3371_v13, %s3017_s25  ;;  %s3596_s25 = smov 112  }
 0x2c3   : > { %1538 = vrot.lane.b32.xlu1 %v3369_v12, %s3018_s26 }
 0x2c4   : > { %1534 = vrot.lane.b32.xlu0 %v3371_v13, %s3018_s26  ;;  %s352_s26 = scalar_lea.vmem [#allocation2], %s2721_s21 }
 0x2c7   : > { %1720 = vrot.lane.b32.xlu1 %v3369_v12, %s3019_s27 }
 0x2c8   : > { %1717 = vrot.lane.b32.xlu0 %v3371_v13, %s3019_s27  ;;  %s2658_s27 = sshll.u32 %s352_s26, 4  ;;  %s3541_s27 = int_to_ptr.vmem [resolvable:$true] %s2658_s27 }
 0x2cb   : > { %1813 = vrot.lane.b32.xlu1 %v3369_v12, %s3020_s28 }
 0x2cc   : > { %1810 = vrot.lane.b32.xlu0 %v3371_v13, %s3020_s28 }
 0x2cf   : > { %1985 = vrot.lane.b32.xlu1 %v3371_v13, %s3021_s29 }
 0x2d0   : > { %1983 = vrot.lane.b32.xlu0 %v3369_v12, %s3021_s29 }
 0x2d3   : > { %2078 = vrot.lane.b32.xlu1 %v3371_v13, %s3022_s30 }
 0x2d4   : > { %2076 = vrot.lane.b32.xlu0 %v3369_v12, %s3022_s30 }
 0x2d7   : > { %2171 = vrot.lane.b32.xlu1 %v3371_v13, %s3596_s25 }
 0x2d8   : > { %2169 = vrot.lane.b32.xlu0 %v3369_v12, %s3596_s25  ;;  %s2820_s25 = sshll.u32 %s3102_s17, 8  ;;  %s2951_s17 = scalar_lea.vmem %s3541_s27, 256 }
 0x2d9   : > { %s3539_s30 = scalar_lea.hbm %s3591_s10, %s2820_s25  ;;  %p2952_p11 = scmp.ne.s32.totalorder %s3541_s27, %s2951_s17 }
 0x2db   : > { %2264 = vrot.lane.b32.xlu1 %v3371_v13, %s3024_s12  ;;  %p2953_p12 = pnand %p2952_p11, %p3119_p5 }
 0x2dc   : > { %2262 = vrot.lane.b32.xlu0 %v3369_v12, %s3024_s12  ;;  %s3025_s12 = smov [#allocation2]  }
 0x2dd   : > { %p2954_p13 = pneg %p2953_p12  ;;  %s2955_s20 = sshll.u32 %s3025_s12, 4  ;;  %s2956_s20 = int_to_ptr.vmem [resolvable:$false] %s2955_s20 }
 0x2de   : > { %s2957_s21 = scalar_lea.vmem %s2956_s20, 512  ;;  %p2958_p0 = scmp.lt.s32.totalorder %s3541_s27, %s2956_s20 }
 0x2df   : > { %2357 = vperm.xlu1 %2909, %v1532_v14   ;;  %p2959_p1 = scmp.lt.s32.totalorder %s2957_s21, %s2951_s17 }
 0x2e0   : > { %363 = vperm.xlu0 %2908, %v360_v15  }
 0x2e1   : > { %p2960_p2 = por %p2959_p1, %p2958_p0 }
 0x2e3   : > { %p2961_p3 = pnand %p2960_p2, %p2954_p13 }
 0x2e4   : > { %2460 = vperm.xlu0 %2908, %v2376_v16  }
 0x331   : > { %v1550_v18 = vpop.permute.xlu1 %1549 }
 0x332   : > { %v1547_v20 = vpop.permute.xlu0 %1546 }
 0x333   : > { %v1551_v21 = vsel %vm600_vm2, %v1550_v18, %v1547_v20  ;;  %v1554_v24 = vsel %vm600_vm2, %v1547_v20, %v1550_v18  ;;  %v1530_v20 = vld [vmem:[%s3587_s6 + $0x1c] sm:$0xf] }
 0x334   : > { %v1555_v25 = vmul.f32 %v1554_v24, %v3204_v30  ;;  %v1556_v26 = vmul.f32 %v1551_v21, %v3207_v31 }
 0x335   : > { %v1539_v29 = vpop.permute.xlu1 %1538 }
 0x336   : > { %v1535_v34 = vpop.permute.xlu0 %1534  ;;  %2772 = vmatprep.subr.msk.mxu1 %vm372_vm0, %v1556_v26  ;;  %v1531_v26 = vld [vmem:[%s3587_s6 + $0x20] sm:$0xf] }
 0x337   : > { %v1540_v36 = vsel %vm576_vm3, %v1539_v29, %v1535_v34  ;;  %v1543_v37 = vsel %vm576_vm3, %v1535_v34, %v1539_v29  ;;  %2773 = vmatpush1.msk.msra.mxu1 %vm372_vm0, %v1555_v25 }
 0x338   : > { %v1544_v40 = vmul.f32 %v1543_v37, %v3216_v38  ;;  %v1545_v30 = vmul.f32 %v1540_v36, %v3219_v39  ;;  %2774 = vmatmul.mubr.msk.f32.vlgmr.msra.gmra.mrb[4].mxu1 %vm368_vm1, %v1524_v32  ;;  %v1523_v38 = vld [vmem:[%s3587_s6] sm:$0xf]  ;;  %v2804_v37 = vld [vmem:[%s3589_s8 + $0x8] sm:$0xff] }
 0x339   : > { %v1721_v31 = vpop.permute.xlu1 %1720  ;;  %1710 = vmatprep.mubr.f32.mxu1 %v3015_v0  ;;  %v2377_v36 = vld [vmem:[%s3589_s8] sm:$0xff] }
 0x33a   : > { %v1718_v41 = vpop.permute.xlu0 %1717  ;;  %2775 = vmatprep.subr.msk.mxu1 %vm372_vm0, %v1545_v30 }
 0x33b   : > { %v1722_v42 = vsel %vm785_vm4, %v1721_v31, %v1718_v41  ;;  %2776 = vmatpush1.msk.msra.mxu1 %vm372_vm0, %v1544_v40  ;;  %v1725_v43 = vsel %vm785_vm4, %v1718_v41, %v1721_v31 }
 0x33c   : > { %v1727_v44 = vmul.f32 %v1722_v42, %v3236_v49  ;;  %v1726_v48 = vmul.f32 %v1725_v43, %v3244_v53 }
 0x33d   : > { %v1814_v46 = vpop.permute.xlu1 %1813 }
 0x33e   : > { %v1811_v39 = vpop.permute.xlu0 %1810  ;;  %2778 = vmatprep.subr.msk.mxu1 %vm372_vm0, %v1727_v44 }
 0x33f   : > { %v1815_v50 = vsel %vm892_vm5, %v1814_v46, %v1811_v39  ;;  %v1818_v49 = vsel %vm892_vm5, %v1811_v39, %v1814_v46 }
 0x340   : > { %v1820_v51 = vmul.f32 %v1815_v50, %v3251_v57  ;;  %2777 = vmatmul.mubr.msk.f32.vlgmr.msra.gmra.mrb[4].mxu1 %vm368_vm1, %v1523_v38  ;;  %v1819_v53 = vmul.f32 %v1818_v49, %v3265_v1 }
 0x341   : > { %2779 = vmatpush1.msk.msra.mxu1 %vm372_vm0, %v1726_v48  ;;  %1801 = vmatprep.mubr.f32.mxu1 %v3015_v0  ;;  %v1986_v57 = vpop.permute.xlu1 %1985 }
 0x342   : > { %2781 = vmatprep.subr.msk.mxu1 %vm372_vm0, %v1820_v51  ;;  %v1984_v54 = vpop.permute.xlu0 %1983 }
 0x343   : > { %v1991_v55 = vsel %vm1078_vm6, %v1986_v57, %v1984_v54  ;;  %v1987_v59 = vsel %vm1078_vm6, %v1984_v54, %v1986_v57 }
 0x344   : > { %v1993_v1 = vmul.f32 %v1991_v55, %v3281_v10  ;;  %v1992_v10 = vmul.f32 %v1987_v59, %v3297_v17  ;;  %v1528_v17 = vld [vmem:[%s3587_s6 + $0x14] sm:$0xf] }
 0x345   : > { %v2079_v27 = vpop.permute.xlu1 %2078 }
 0x346   : > { %v2077_v58 = vpop.permute.xlu0 %2076 }
 0x347   : > { %v2084_v60 = vsel %vm1185_vm7, %v2079_v27, %v2077_v58  ;;  %v2080_v4 = vsel %vm1185_vm7, %v2077_v58, %v2079_v27 }
 0x348   : > { %2780 = vmatmul.mubr.msk.f32.vlgmr.msra.gmra.mrb[4].mxu1 %vm368_vm1, %v1525_v52  ;;  %v2086_v63 = vmul.f32 %v2084_v60, %v3301_v19  ;;  %v2085_v19 = vmul.f32 %v2080_v4, %v3317_v33 }
 0x349   : > { %2782 = vmatpush1.msk.msra.mxu1 %vm372_vm0, %v1819_v53  ;;  %1894 = vmatprep.mubr.f32.mxu1 %v3015_v0  ;;  %v2172_v2 = vpop.permute.xlu1 %2171 }
 0x34a   : > { %2784 = vmatprep.subr.msk.mxu1 %vm372_vm0, %v3371_v13  ;;  %v2170_v61 = vpop.permute.xlu0 %2169 }
 0x34b   : > { %v2177_v5 = vsel %vm1292_vm8, %v2172_v2, %v2170_v61  ;;  %v2173_v33 = vsel %vm1292_vm8, %v2170_v61, %v2172_v2 }
 0x34c   : > { %v2179_v9 = vmul.f32 %v2177_v5, %v3321_v35 }
 0x34d   : > { %v2265_v13 = vpop.permute.xlu1 %2264 }
 0x34e   : > { %v2263_v3 = vpop.permute.xlu0 %2262 }
 0x34f   : > { %v2270_v35 = vsel %vm1399_vm9, %v2265_v13, %v2263_v3  ;;  %v2266_v18 = vsel %vm1399_vm9, %v2263_v3, %v2265_v13 }
 0x350   : > { %2783 = vmatmul.mubr.msk.f32.vlgmr.msra.gmra.mrb[4].mxu1 %vm368_vm1, %v1526_v56  ;;  %v2272_v16 = vmul.f32 %v2270_v35, %v3341_v47 }
 0x351   : > { %2785 = vmatpush1.msk.msra.mxu1 %vm372_vm0, %v3369_v12  ;;  %1974 = vmatprep.mubr.f32.mxu1 %v3015_v0 }
 0x352   : > { %2787 = vmatprep.subr.msk.mxu1 %vm372_vm0, %v1993_v1 }
 0x358   : > { %2786 = vmatmul.mubr.msk.f32.vlgmr.msra.gmra.mrb[4].mxu1 %vm368_vm1, %v1527_v62 }
 0x359   : > { %2788 = vmatpush1.msk.msra.mxu1 %vm372_vm0, %v1992_v10  ;;  %2067 = vmatprep.mubr.f32.mxu1 %v3015_v0 }
 0x35a   : > { %2790 = vmatprep.subr.msk.mxu1 %vm372_vm0, %v2086_v63 }
 0x35e   : > { %v2358_v40 = vpop.permute.xlu1 %2357 }
 0x35f   : > { %v364_v6 = vpop.permute.xlu0 %363 }
 0x360   : > { %v444_v11 = vadd.f32 %v3153_v7, %v364_v6  ;;  %v446_v12 = vadd.f32 %v3155_v8, %v364_v6  ;;  %2789 = vmatmul.mubr.msk.f32.vlgmr.msra.gmra.mrb[4].mxu1 %vm368_vm1, %v1528_v17  ;;  %v1529_v7 = vld [vmem:[%s3587_s6 + $0x18] sm:$0xf]  ;;  %v2178_v8 = vmul.f32 %v2173_v33, %v3337_v45  ;;  %v2271_v45 = vmul.f32 %v2266_v18, %v3354_v28 }
 0x361   : > { %2791 = vmatpush1.msk.msra.mxu1 %vm372_vm0, %v2085_v19  ;;  %2160 = vmatprep.mubr.f32.mxu1 %v3015_v0 }
 0x362   : > { %v2727_v14 = vmul.f32 -1.442695, %v444_v11  ;;  %v2728_v15 = vmul.f32 -1.442695, %v446_v12  ;;  %2793 = vmatprep.subr.msk.mxu1 %vm372_vm0, %v2179_v9 }
 0x363   : > { %v2461_v49 = vpop.permute.xlu0 %2460 }
 0x364   : > { %2927 = vpow2.f32 %v2727_v14 }
 0x365   : > { %2929 = vpow2.f32 %v2728_v15 }
 0x368   : > { %2792 = vmatmul.mubr.msk.f32.vlgmr.msra.gmra.mrb[4].mxu1 %vm368_vm1, %v1529_v7 }
 0x369   : > { %2794 = vmatpush1.msk.msra.mxu1 %vm372_vm0, %v2178_v8  ;;  %2253 = vmatprep.mubr.f32.mxu1 %v3015_v0 }
 0x36a   : > { %2796 = vmatprep.subr.msk.mxu1 %vm372_vm0, %v2272_v16 }
 0x36e   : > { %v2928_v21 = vpop.eup %2927 }
 0x36f   : > { %v2930_v24 = vpop.eup %2929  ;;  %v454_v25 = vadd.f32 1.0, %v2928_v21 }
 0x370   : > { %v455_v47 = vadd.f32 1.0, %v2930_v24  ;;  %2795 = vmatmul.mubr.msk.f32.vlgmr.msra.gmra.mrb[4].mxu1 %vm368_vm1, %v1530_v20 }
 0x371   : > { %2931 = vrcp.f32 %v454_v25  ;;  %2797 = vmatpush1.msk.msra.mxu1 %vm372_vm0, %v2271_v45  ;;  %2346 = vmatprep.mubr.f32.mxu1 %v3015_v0 }
 0x372   : > { %2933 = vrcp.f32 %v455_v47 }
 0x378   : > { %2798 = vmatmul.mubr.msk.f32.vlgmr.msra.gmra.mrb[4].mxu1 %vm368_vm1, %v1531_v26 }
 0x37b   : > { %v2932_v29 = vpop.eup %2931 }
 0x37c   : > { %v2934_v32 = vpop.eup %2933  ;;  %v460_v34 = vmul.f32 %v2932_v29, %v444_v11 }
 0x37d   : > { %v461_v28 = vmul.f32 %v2934_v32, %v446_v12 }
 0x37f   : > { %2801 = vmatprep.subr.msk.mxu0 %vm372_vm0, %v461_v28 }
 0x380   : > { %2802 = vmatpush1.msk.msra.mxu0 %vm372_vm0, %v460_v34 }
 0x381   : > { %2805 = vmatprep.subr.msk.mxu0 %vm372_vm0, %v3159_v23  ;;  %2803 = vmatmul.mubr.msk.f32.vlgmr.msra.gmra.mrb[2].mxu0 %vm368_vm1, %v2377_v36 }
 0x382   : > { %2806 = vmatpush1.msk.msra.mxu0 %vm372_vm0, %v3157_v22  ;;  %2534 = vmatprep.mubr.f32.mxu0 %v3015_v0 }
 0x389   : > { %2807 = vmatmul.mubr.msk.f32.vlgmr.msra.gmra.mrb[2].mxu0 %vm368_vm1, %v2804_v37 }
 0x38a   : > { %2618 = vmatprep.mubr.f32.mxu0 %v3015_v0  ;;  %v2808_v0 = vld [vmem:[%s3589_s8 + $0x10] sm:$0xff] }
 0x44b   : > { %v2348_v30 = vpop.f32.mrb[4].mxu1 }
 0x44c   : > { %v2360_v31 = vadd.f32 %v2358_v40, %v2348_v30  ;;  %v2350_v41 = vpop.f32.mrb[5].mxu1 }
 0x44d   : > { %v2361_v23 = vadd.f32 %v2358_v40, %v2350_v41 }
 0x44e   : > { %v2799_v42 = vmul.f32 -1.442695, %v2360_v31 }
 0x44f   : > { %v2800_v43 = vmul.f32 -1.442695, %v2361_v23 }
 0x450   : > { %2935 = vpow2.f32 %v2799_v42 }
 0x451   : > { %2937 = vpow2.f32 %v2800_v43 }
 0x45a   : > { %v2936_v22 = vpop.eup %2935 }
 0x45b   : > { %v2938_v44 = vpop.eup %2937  ;;  %v2368_v46 = vadd.f32 1.0, %v2936_v22 }
 0x45c   : > { %v2369_v38 = vadd.f32 1.0, %v2938_v44 }
 0x45d   : > { %2939 = vrcp.f32 %v2368_v46 }
 0x45e   : > { %2941 = vrcp.f32 %v2369_v38 }
 0x467   : > { %v2940_v39 = vpop.eup %2939 }
 0x468   : > { %v2942_v48 = vpop.eup %2941  ;;  %v2374_v51 = vmul.f32 %v2940_v39, %v2360_v31 }
 0x469   : > { %v2375_v50 = vmul.f32 %v2942_v48, %v2361_v23 }
 0x46b   : > { %2809 = vmatprep.subr.msk.mxu0 %vm372_vm0, %v2375_v50 }
 0x46c   : > { %2810 = vmatpush1.msk.msra.mxu0 %vm372_vm0, %v2374_v51 }
 0x46d   : > { %2811 = vmatmul.mubr.msk.f32.vlgmr.msra.gmra.mrb[2].mxu0 %vm368_vm1, %v2808_v0 }
 0x540   : > { %v2620_v52 = vpop.f32.mrb[2].mxu0 }
 0x541   : > { %v2821_v53 = vadd.f32 %v2620_v52, %v2461_v49  ;;  %v2622_v54 = vpop.f32.mrb[3].mxu0 }
 0x542   : > { %v2822_v57 = vadd.f32 %v2622_v54, %v2461_v49 }
 0x543   : > { %v2812_v55 = vmul.f32 -1.442695, %v2821_v53 }
 0x544   : > { %v2813_v56 = vmul.f32 -1.442695, %v2822_v57 }
 0x545   : > { %2943 = vpow2.f32 %v2812_v55 }
 0x546   : > { %2945 = vpow2.f32 %v2813_v56 }
 0x54f   : > { %v2944_v58 = vpop.eup %2943 }
 0x550   : > { %v2946_v1 = vpop.eup %2945  ;;  %v2633_v27 = vadd.f32 1.0, %v2944_v58 }
 0x551   : > { %v2634_v59 = vadd.f32 1.0, %v2946_v1 }
 0x552   : > { %2947 = vrcp.f32 %v2633_v27 }
 0x553   : > { %2949 = vrcp.f32 %v2634_v59 }
 0x55c   : > { %v2948_v60 = vpop.eup %2947 }
 0x55d   : > { %v2950_v61 = vpop.eup %2949  ;;  %v2639_v62 = vmul.f32 %v2948_v60, %v2821_v53 }
 0x55e   : > { %v2640_v10 = vmul.f32 %v2950_v61, %v2822_v57 }
 0x55f   : > { %2641 = vst [vmem:[%s352_s26] sm:$0xff] %v2639_v62 }
 0x560   : > { %2642 = vst [vmem:[%s352_s26 + $0x8] sm:$0xff] %v2640_v10 }
 0x561   : > { %2964 = shalt.err (!%p2961_p3)
}
 0x562   : > { %s2965_s11 = scalar_lea.hbm %s3539_s30, 256  ;;  %s2969_s28 = scalar_lea.hbm %s3591_s10, 512 }
 0x563   : > { %p2966_p4 = scmp.ne.s32.totalorder %s3539_s30, %s2965_s11  ;;  %p2970_p9 = scmp.lt.u32.totalorder %s3539_s30, %s3591_s10 }
 0x564   : > { %p2971_p10 = scmp.lt.u32.totalorder %s2969_s28, %s2965_s11  ;;  %p2973_p12 = scmp.lt.u32.totalorder %s2965_s11, %s3539_s30 }
 0x565   : > { %p2967_p7 = pnand %p2966_p4, %p3119_p5 }
 0x566   : > { %p2972_p11 = por %p2971_p10, %p2970_p9 }
 0x567   : > { %p2968_p8 = pneg %p2967_p7 }
 0x568   : > { %p2974_p13 = por %p2973_p12, %p2972_p11 }
 0x56a   : > { %p2975_p0 = pnand %p2974_p13, %p2968_p8 }
 0x56c   : > { %2978 = shalt.err (!%p2975_p0)
}
 0x56d   : > { %2859 = dma.vmem_to_hbm [thread:$0]  (%p3119_p5), %s3541_s27, 256, %s3539_s30, %s2644_s18  }
 0x56e PF: > { %p2865_p1 = scmp.ge.s32.totalorder %s3013_s16, 2  ;;  %s2670_s17 = sand.u32 1, %s3001_s13  }
 0x56f   : > { %s2671_s20 = scalar_lea.sflag [#allocation3], %s2670_s17 }
 0x570   : > { %p2862_p2 = pnand %p2865_p1, %p3123_p6 }
 0x572   : > { %2996 = dma.done.wait (!%p2862_p2), %s2671_s20, 256  }
 0x573   : > { %2998 = vsyncadd (!%p2862_p2), %s2671_s20, 4294967040  ;;  %p20_p3 = scmp.ge.s32.totalorder %s3106_s19, 4   ;;  %s3597_s13 = smov %s3005_s14 }
 0x574   : > { %s3598_s14 = smov %s3009_s15  ;;  %s3599_s15 = smov %s3117_s22 }
 0x575   : > { %s3600_s16 = smov %s3106_s19  ;;  %22 = sbr.rel (!%p20_p3) target bundleno = 3 (0x3), region = 106 }
 0x57c   :  { %2676 = vsyncpa [#allocation3], 1 }
 0x57d   :  { %2678 = vsyncpa [#allocation3 + $0x1], 1 }

</bundles_post_ra>
